<compile_context>
chip_gen: v6e
topology: v6e:2x2x1
jax: 0.10.0
libtpu: 0.0.40
codegen_flags: <defaults>
</compile_context>

<pallas_src>
import functools
import math

import jax
import jax.numpy as jnp
from jax import lax
from jax.experimental import pallas as pl
from jax.experimental.pallas import tpu as pltpu

LN_EPS = 1e-12

WEIGHT_NAMES = ("wqkv", "bqkv", "wo", "bo", "ln1_g", "ln1_b",
                "w1", "b1", "w2", "b2", "ln2_g", "ln2_b")


# ----------------------------- in-kernel helpers -----------------------------
def _layernorm(x, g, b):
    u = jnp.mean(x, axis=-1, keepdims=True)
    s = jnp.mean((x - u) ** 2, axis=-1, keepdims=True)
    return (x - u) / jnp.sqrt(s + LN_EPS) * g + b


def _gelu(x):
    # erf-based gelu, matching the reference repo's gelu()
    return x * 0.5 * (1.0 + lax.erf(x / math.sqrt(2.0)))


def _transformer_layer(x, pad, wqkv, bqkv, wo, bo, ln1g, ln1b,
                       w1, b1, w2, b2, ln2g, ln2b, *, num_heads):
    """One BERT-style layer on a [Bblk, S, H] activation block (all f32 in/out)."""
    Bblk, S, H = x.shape
    nh = num_heads
    hs = H // nh
    M = Bblk * S
    scale = 1.0 / math.sqrt(hs)

    x2 = x.reshape(M, H)                                   # batch folded into M
    xb = x2.astype(jnp.bfloat16)

    # fused QKV projection: one [M,H] @ [H,3H] matmul
    qkv = jnp.dot(xb, wqkv, preferred_element_type=jnp.float32) + bqkv   # [M, 3H]
    q = qkv[:, 0:H].reshape(Bblk, S, H)
    k = qkv[:, H:2 * H].reshape(Bblk, S, H)
    v = qkv[:, 2 * H:3 * H].reshape(Bblk, S, H)

    # additive attention mask built in-kernel: (1 - pad_key * causal) * -10000
    row = lax.broadcasted_iota(jnp.int32, (S, S), 0)
    col = lax.broadcasted_iota(jnp.int32, (S, S), 1)
    causal = (col <= row).astype(jnp.float32)              # [S, S]
    addmask = (1.0 - pad * causal[None, :, :]) * -10000.0  # [Bblk, S, S]

    ctx_heads = []
    for h in range(nh):                                    # static head unroll
        sl = slice(h * hs, (h + 1) * hs)
        qh = q[:, :, sl].astype(jnp.bfloat16)
        kh = k[:, :, sl].astype(jnp.bfloat16)
        vh = v[:, :, sl].astype(jnp.bfloat16)
        s = jnp.einsum('bqd,bkd->bqk', qh, kh,
                       preferred_element_type=jnp.float32) * scale + addmask
        s = s - jnp.max(s, axis=-1, keepdims=True)
        p = jnp.exp(s)
        p = p * pl.reciprocal(jnp.sum(p, axis=-1, keepdims=True), approx=True)
        ctx_heads.append(jnp.einsum('bqk,bkd->bqd', p.astype(jnp.bfloat16), vh,
                                    preferred_element_type=jnp.float32))
    # single K=H output projection over concatenated heads
    ctx = jnp.concatenate(ctx_heads, axis=-1).reshape(M, H)
    attn = jnp.dot(ctx.astype(jnp.bfloat16), wo,
                   preferred_element_type=jnp.float32) + bo
    h1 = _layernorm(attn + x2, ln1g, ln1b)                 # [M, H]

    ff = jnp.dot(h1.astype(jnp.bfloat16), w1, preferred_element_type=jnp.float32) + b1
    ff = _gelu(ff)
    ff = jnp.dot(ff.astype(jnp.bfloat16), w2, preferred_element_type=jnp.float32) + b2
    out = _layernorm(ff + h1, ln2g, ln2b)
    return out.reshape(Bblk, S, H)


# --------------------------------- kernels -----------------------------------
def embed_ln_kernel(emb_ref, g_ref, b_ref, out_ref):
    x = emb_ref[...].astype(jnp.float32)                   # [Bblk, S, H]
    out_ref[...] = _layernorm(x, g_ref[...], b_ref[...]).astype(out_ref.dtype)


def encoder_stack_kernel(x_ref, pad_ref,
                         wqkv_ref, bqkv_ref, wo_ref, bo_ref, ln1g_ref, ln1b_ref,
                         w1_ref, b1_ref, w2_ref, b2_ref, ln2g_ref, ln2b_ref,
                         out_ref, xs_ref, *, num_heads):
    l = pl.program_id(1)

    @pl.when(l == 0)
    def _():
        xs_ref[...] = x_ref[...].astype(jnp.float32)

    out = _transformer_layer(
        xs_ref[...], pad_ref[...],
        wqkv_ref[...], bqkv_ref[...], wo_ref[...], bo_ref[...],
        ln1g_ref[...], ln1b_ref[...],
        w1_ref[...], b1_ref[...], w2_ref[...], b2_ref[...],
        ln2g_ref[...], ln2b_ref[...], num_heads=num_heads)
    xs_ref[...] = out

    @pl.when(l == pl.num_programs(1) - 1)
    def _():
        out_ref[...] = out.astype(out_ref.dtype)


def decoder_stack_kernel(mu_ref, lv_ref, pad_ref,
                         wqkv_ref, bqkv_ref, wo_ref, bo_ref, ln1g_ref, ln1b_ref,
                         w1_ref, b1_ref, w2_ref, b2_ref, ln2g_ref, ln2b_ref,
                         z_ref, out_ref, xs_ref, *, num_heads):
    l = pl.program_id(1)

    @pl.when(l == 0)
    def _():
        # reparameterization fused into the first decoder layer's input read:
        # z = mu + exp(0.5 * logvar)  (reparameterization1; eval-mode rep.3 is identical)
        z = mu_ref[...].astype(jnp.float32) + jnp.exp(0.5 * lv_ref[...].astype(jnp.float32))
        z_ref[...] = z.astype(z_ref.dtype)
        xs_ref[...] = z

    out = _transformer_layer(
        xs_ref[...], pad_ref[...],
        wqkv_ref[...], bqkv_ref[...], wo_ref[...], bo_ref[...],
        ln1g_ref[...], ln1b_ref[...],
        w1_ref[...], b1_ref[...], w2_ref[...], b2_ref[...],
        ln2g_ref[...], ln2b_ref[...], num_heads=num_heads)
    xs_ref[...] = out

    @pl.when(l == pl.num_programs(1) - 1)
    def _():
        out_ref[...] = out.astype(out_ref.dtype)


# -------------------------------- wrappers -----------------------------------
def _pick_bblk(B, S):
    """Largest divisor of B keeping Bblk*S around the MXU-friendly M target."""
    target_m = 256
    best = 1
    for cand in range(1, B + 1):
        if B % cand == 0 and cand * S <= max(target_m, S):
            best = cand
    return best


def _vmem_limit_bytes(H, I, S, bblk):
    w = 2 * 2 * (3 * H * H + H * H + 2 * H * I)        # bf16 weights, double-buffered
    a = 16 * bblk * S * max(H, I, S) * 4               # activations / temporaries (generous)
    est = w + a + (2 << 20)
    return int(min(64 * 2 ** 20, max(32 * 2 ** 20, est)))


def _stack_weight_specs(sp):
    # all stacked weights are [L, a, b]; squeeze the layer dim out of the kernel Ref
    return [pl.BlockSpec((pl.Squeezed(),) + sp[n].shape[1:], lambda b, l: (l, 0, 0))
            for n in WEIGHT_NAMES]


def run_embed_ln(emb, g, b, bblk):
    B, S, H = emb.shape
    nb = B // bblk
    return pl.pallas_call(
        embed_ln_kernel,
        out_shape=jax.ShapeDtypeStruct((B, S, H), jnp.float32),
        grid=(nb,),
        in_specs=[pl.BlockSpec((bblk, S, H), lambda i: (i, 0, 0)),
                  pl.BlockSpec((1, H), lambda i: (0, 0)),
                  pl.BlockSpec((1, H), lambda i: (0, 0))],
        out_specs=pl.BlockSpec((bblk, S, H), lambda i: (i, 0, 0)),
        compiler_params=pltpu.CompilerParams(dimension_semantics=("parallel",)),
    )(emb, g, b)


def run_encoder_stack(x, pad, sp, num_heads, bblk):
    B, S, H = x.shape
    L, _, threeH = sp["wqkv"].shape
    I = sp["w1"].shape[2]
    nb = B // bblk
    act_in = pl.BlockSpec((bblk, S, H), lambda b, l: (b, 0, 0))
    act_out = pl.BlockSpec((bblk, S, H), lambda b, l: (b, 0, 0))
    pad_spec = pl.BlockSpec((bblk, 1, S), lambda b, l: (b, 0, 0))
    kernel = functools.partial(encoder_stack_kernel, num_heads=num_heads)
    return pl.pallas_call(
        kernel,
        out_shape=jax.ShapeDtypeStruct((B, S, H), jnp.float32),
        grid=(nb, L),
        in_specs=[act_in, pad_spec] + _stack_weight_specs(sp),
        out_specs=act_out,
        scratch_shapes=[pltpu.VMEM((bblk, S, H), jnp.float32)],
        compiler_params=pltpu.CompilerParams(
            dimension_semantics=("parallel", "arbitrary"),
            vmem_limit_bytes=_vmem_limit_bytes(H, I, S, bblk)),
    )(x, pad, *[sp[n] for n in WEIGHT_NAMES])


def run_decoder_stack(mu, logvar, pad, sp, num_heads, bblk):
    B, S, H = mu.shape
    L = sp["wqkv"].shape[0]
    I = sp["w1"].shape[2]
    nb = B // bblk
    act_mu = pl.BlockSpec((bblk, S, H), lambda b, l: (b, 0, 0))
    act_lv = pl.BlockSpec((bblk, S, H), lambda b, l: (b, 0, 0))
    act_z = pl.BlockSpec((bblk, S, H), lambda b, l: (b, 0, 0))
    act_out = pl.BlockSpec((bblk, S, H), lambda b, l: (b, 0, 0))
    pad_spec = pl.BlockSpec((bblk, 1, S), lambda b, l: (b, 0, 0))
    kernel = functools.partial(decoder_stack_kernel, num_heads=num_heads)
    z, rec = pl.pallas_call(
        kernel,
        out_shape=(jax.ShapeDtypeStruct((B, S, H), jnp.float32),
                   jax.ShapeDtypeStruct((B, S, H), jnp.float32)),
        grid=(nb, L),
        in_specs=[act_mu, act_lv, pad_spec] + _stack_weight_specs(sp),
        out_specs=(act_z, act_out),
        scratch_shapes=[pltpu.VMEM((bblk, S, H), jnp.float32)],
        compiler_params=pltpu.CompilerParams(
            dimension_semantics=("parallel", "arbitrary"),
            vmem_limit_bytes=_vmem_limit_bytes(H, I, S, bblk)),
    )(mu, logvar, pad, *[sp[n] for n in WEIGHT_NAMES])
    return z, rec


# ---------------------------- parameter creation ------------------------------
def init_stack_params(key, n_layers, H, I, std):
    ks = jax.random.split(key, 4)

    def w(k, shape):
        return (std * jax.random.normal(k, shape, jnp.float32)).astype(jnp.bfloat16)

    ones = jnp.ones((n_layers, 1, H), jnp.float32)
    zeros = jnp.zeros((n_layers, 1, H), jnp.float32)
    return dict(
        wqkv=w(ks[0], (n_layers, H, 3 * H)), bqkv=jnp.zeros((n_layers, 1, 3 * H), jnp.float32),
        wo=w(ks[1], (n_layers, H, H)),       bo=jnp.zeros((n_layers, 1, H), jnp.float32),
        ln1_g=ones, ln1_b=zeros,
        w1=w(ks[2], (n_layers, H, I)),       b1=jnp.zeros((n_layers, 1, I), jnp.float32),
        w2=w(ks[3], (n_layers, I, H)),       b2=jnp.zeros((n_layers, 1, H), jnp.float32),
        ln2_g=ones, ln2_b=zeros,
    )


def init_params(key, item_size, max_seq_len, H, n_layers, std=0.02):
    I = 4 * H
    keys = jax.random.split(key, 5)
    item_emb = std * jax.random.normal(keys[0], (item_size, H), jnp.float32)
    pos_emb = std * jax.random.normal(keys[1], (max_seq_len, H), jnp.float32)
    return dict(item_emb=item_emb, pos_emb=pos_emb,
                ln_g=jnp.ones((1, H), jnp.float32),
                ln_b=jnp.zeros((1, H), jnp.float32),
                enc_mu=init_stack_params(keys[2], n_layers, H, I, std),
                enc_logvar=init_stack_params(keys[3], n_layers, H, I, std),
                dec=init_stack_params(keys[4], n_layers, H, I, std),
                log_alpha=jnp.float32(0.0),      # VariationalDropout (layerwise)
                drop_rate=jnp.float32(0.2))      # unused in forward


# ------------------------------- full forward ---------------------------------
def contrastvae_vd_forward(params, input_ids, num_heads):
    """args.variational_dropout branch of ContrastVAE_VD.forward (eval mode)."""
    B, S = input_ids.shape
    H = params["item_emb"].shape[1]
    assert H % num_heads == 0
    bblk = _pick_bblk(B, S)

    # add_position_embedding: gathers are glue; LayerNorm in Pallas. Dropout = id.
    item_emb = params["item_emb"][input_ids]                     # [B, S, H]
    pos_emb = params["pos_emb"][:S][None, :, :]                  # [1, S, H]
    seq_emb = run_embed_ln(item_emb + pos_emb, params["ln_g"], params["ln_b"], bblk)

    # key-padding vector; the full (1 - pad*causal)*-10000 mask is built in-kernel
    pad = (input_ids > 0).astype(jnp.float32)[:, None, :]        # [B, 1, S]

    # Eval-mode determinism: the reference calls encode() twice on identical
    # inputs, so mu1 == mu2 and logvar1 == logvar2; compute each stack once.
    mu = run_encoder_stack(seq_emb, pad, params["enc_mu"], num_heads, bblk)
    logvar = run_encoder_stack(seq_emb, pad, params["enc_logvar"], num_heads, bblk)

    # reparameterization1: z1 = mu + exp(0.5*logvar); reparameterization3 passes
    # std through VariationalDropout which is identity in deterministic mode, so
    # z2 == z1 and both decodes are identical -> decode once (fused reparam).
    # TODO(synk): training-mode multiplicative Gaussian noise of VariationalDropout
    # and nn.Dropout are stochastic and not modeled here.
    z, rec = run_decoder_stack(mu, logvar, pad, params["dec"], num_heads, bblk)
    alpha = jnp.exp(params["log_alpha"])

    return (rec, rec, mu, mu, logvar, logvar, z, z, alpha)


# ----------------------------------- main --------------------------------------
if __name__ == "__main__":
    B, S, H = 2, 8, 32            # batch, max_seq_length, hidden_size
    HEADS, LAYERS = 2, 2          # num_attention_heads, num_hidden_layers
    ITEM_SIZE = 11                # item vocabulary (0 = padding id)

    key = jax.random.PRNGKey(0)
    k_ids, k_params = jax.random.split(key)
    input_ids = jax.random.randint(k_ids, (B, S), 0, ITEM_SIZE, dtype=jnp.int32)
    params = init_params(k_params, ITEM_SIZE, S, H, LAYERS)

    fwd = jax.jit(functools.partial(contrastvae_vd_forward, num_heads=HEADS))
    outs = fwd(params, input_ids)
    jax.block_until_ready(outs)

    rec1, rec2, mu1, mu2, lv1, lv2, z1, z2, alpha = outs
    assert rec1.shape == (B, S, H) and rec2.shape == (B, S, H)
    assert mu1.shape == (B, S, H) and lv1.shape == (B, S, H)
    assert z1.shape == (B, S, H) and z2.shape == (B, S, H)
    assert bool(jnp.all(jnp.isfinite(rec1)))
    print("KERNEL_OK")
</pallas_src>

<mosaic_0001>
module attributes {stable_mosaic.version = 11 : i64} {
  func.func @embed_ln_kernel(%arg0: i32, %arg1: memref<2x8x32xf32, #tpu.memory_space<vmem>>, %arg2: memref<1x32xf32, #tpu.memory_space<vmem>>, %arg3: memref<1x32xf32, #tpu.memory_space<vmem>>, %arg4: memref<2x8x32xf32, #tpu.memory_space<vmem>>) attributes {dimension_semantics = [#tpu.dimension_semantics<parallel>], iteration_bounds = array<i64: 1>, scalar_prefetch = 0 : i64, scratch_operands = 0 : i64, tpu.core_type = #tpu.core_type<tc>, window_params = [{transform_indices = @transform_0, window_bounds = array<i64: 2, 8, 32>}, {pipeline_mode = #tpu.pipeline_mode<synchronous>, transform_indices = @transform_1, window_bounds = array<i64: 1, 32>}, {pipeline_mode = #tpu.pipeline_mode<synchronous>, transform_indices = @transform_2, window_bounds = array<i64: 1, 32>}, {transform_indices = @transform_3, window_bounds = array<i64: 2, 8, 32>}]} {
    %c0 = arith.constant 0 : index
    %c0_0 = arith.constant 0 : index
    %c0_1 = arith.constant 0 : index
    %0 = vector.load %arg1[%c0, %c0_0, %c0_1] : memref<2x8x32xf32, #tpu.memory_space<vmem>>, vector<2x8x32xf32>
    %c0_2 = arith.constant 0 : index
    %c0_3 = arith.constant 0 : index
    %1 = vector.load %arg2[%c0_2, %c0_3] : memref<1x32xf32, #tpu.memory_space<vmem>>, vector<1x32xf32>
    %c0_4 = arith.constant 0 : index
    %c0_5 = arith.constant 0 : index
    %2 = vector.load %arg3[%c0_4, %c0_5] : memref<1x32xf32, #tpu.memory_space<vmem>>, vector<1x32xf32>
    %cst = arith.constant dense<0.000000e+00> : vector<2x8xf32>
    %3 = vector.multi_reduction <add>, %0, %cst [2] : vector<2x8x32xf32> to vector<2x8xf32>
    %4 = vector.shape_cast %3 : vector<2x8xf32> to vector<2x8x1xf32>
    %cst_6 = arith.constant 3.200000e+01 : f32
    %5 = vector.broadcast %cst_6 : f32 to vector<2x8x1xf32>
    %6 = arith.divf %4, %5 : vector<2x8x1xf32>
    %7 = vector.broadcast %6 : vector<2x8x1xf32> to vector<2x8x32xf32>
    %8 = arith.subf %0, %7 : vector<2x8x32xf32>
    %9 = arith.mulf %8, %8 : vector<2x8x32xf32>
    %cst_7 = arith.constant dense<0.000000e+00> : vector<2x8xf32>
    %10 = vector.multi_reduction <add>, %9, %cst_7 [2] : vector<2x8x32xf32> to vector<2x8xf32>
    %11 = vector.shape_cast %10 : vector<2x8xf32> to vector<2x8x1xf32>
    %cst_8 = arith.constant 3.200000e+01 : f32
    %12 = vector.broadcast %cst_8 : f32 to vector<2x8x1xf32>
    %13 = arith.divf %11, %12 : vector<2x8x1xf32>
    %14 = vector.broadcast %6 : vector<2x8x1xf32> to vector<2x8x32xf32>
    %15 = arith.subf %0, %14 : vector<2x8x32xf32>
    %cst_9 = arith.constant 9.99999996E-13 : f32
    %16 = vector.broadcast %cst_9 : f32 to vector<2x8x1xf32>
    %17 = arith.addf %13, %16 : vector<2x8x1xf32>
    %18 = math.sqrt %17 : vector<2x8x1xf32>
    %19 = vector.broadcast %18 : vector<2x8x1xf32> to vector<2x8x32xf32>
    %20 = arith.divf %15, %19 : vector<2x8x32xf32>
    %21 = vector.shape_cast %1 : vector<1x32xf32> to vector<1x1x32xf32>
    %22 = vector.broadcast %21 : vector<1x1x32xf32> to vector<2x8x32xf32>
    %23 = arith.mulf %20, %22 : vector<2x8x32xf32>
    %24 = vector.shape_cast %2 : vector<1x32xf32> to vector<1x1x32xf32>
    %25 = vector.broadcast %24 : vector<1x1x32xf32> to vector<2x8x32xf32>
    %26 = arith.addf %23, %25 : vector<2x8x32xf32>
    %c0_10 = arith.constant 0 : index
    %c0_11 = arith.constant 0 : index
    %c0_12 = arith.constant 0 : index
    %27 = vector.load %arg4[%c0_10, %c0_11, %c0_12] : memref<2x8x32xf32, #tpu.memory_space<vmem>>, vector<2x8x32xf32>
    tpu.vector_store %arg4[%c0_10, %c0_11, %c0_12], %26 {strides = array<i32>} : memref<2x8x32xf32, #tpu.memory_space<vmem>>, vector<2x8x32xf32>,
    return
  }
  func.func @transform_0(%arg0: i32) -> (i32, i32, i32) {
    %c0_i32 = arith.constant 0 : i32
    %c0_i32_0 = arith.constant 0 : i32
    %c0_i32_1 = arith.constant 0 : i32
    return %arg0, %c0_i32, %c0_i32_0 : i32, i32, i32
  }
  func.func @transform_1(%arg0: i32) -> (i32, i32) {
    %c0_i32 = arith.constant 0 : i32
    %c0_i32_0 = arith.constant 0 : i32
    %c0_i32_1 = arith.constant 0 : i32
    return %c0_i32, %c0_i32_0 : i32, i32
  }
  func.func @transform_2(%arg0: i32) -> (i32, i32) {
    %c0_i32 = arith.constant 0 : i32
    %c0_i32_0 = arith.constant 0 : i32
    %c0_i32_1 = arith.constant 0 : i32
    return %c0_i32, %c0_i32_0 : i32, i32
  }
  func.func @transform_3(%arg0: i32) -> (i32, i32, i32) {
    %c0_i32 = arith.constant 0 : i32
    %c0_i32_0 = arith.constant 0 : i32
    %c0_i32_1 = arith.constant 0 : i32
    return %arg0, %c0_i32, %c0_i32_0 : i32, i32, i32
  }
}

module attributes {stable_mosaic.version = 11 : i64} {
  func.func @encoder_stack_kernel(%arg0: i32, %arg1: i32, %arg2: memref<2x8x32xf32, #tpu.memory_space<vmem>>, %arg3: memref<2x1x8xf32, #tpu.memory_space<vmem>>, %arg4: memref<1x32x96xbf16, #tpu.memory_space<vmem>>, %arg5: memref<1x1x96xf32, #tpu.memory_space<vmem>>, %arg6: memref<1x32x32xbf16, #tpu.memory_space<vmem>>, %arg7: memref<1x1x32xf32, #tpu.memory_space<vmem>>, %arg8: memref<1x1x32xf32, #tpu.memory_space<vmem>>, %arg9: memref<1x1x32xf32, #tpu.memory_space<vmem>>, %arg10: memref<1x32x128xbf16, #tpu.memory_space<vmem>>, %arg11: memref<1x1x128xf32, #tpu.memory_space<vmem>>, %arg12: memref<1x128x32xbf16, #tpu.memory_space<vmem>>, %arg13: memref<1x1x32xf32, #tpu.memory_space<vmem>>, %arg14: memref<1x1x32xf32, #tpu.memory_space<vmem>>, %arg15: memref<1x1x32xf32, #tpu.memory_space<vmem>>, %arg16: memref<2x8x32xf32, #tpu.memory_space<vmem>>, %arg17: memref<2x8x32xf32, #tpu.memory_space<vmem>>) attributes {dimension_semantics = [#tpu.dimension_semantics<parallel>, #tpu.dimension_semantics<arbitrary>], iteration_bounds = array<i64: 1, 2>, scalar_prefetch = 0 : i64, scratch_operands = 1 : i64, tpu.core_type = #tpu.core_type<tc>, window_params = [{transform_indices = @transform_0, window_bounds = array<i64: 2, 8, 32>}, {transform_indices = @transform_1, window_bounds = array<i64: 2, 1, 8>}, {transform_indices = @transform_2, window_bounds = array<i64: 1, 32, 96>}, {transform_indices = @transform_3, window_bounds = array<i64: 1, 1, 96>}, {transform_indices = @transform_4, window_bounds = array<i64: 1, 32, 32>}, {transform_indices = @transform_5, window_bounds = array<i64: 1, 1, 32>}, {transform_indices = @transform_6, window_bounds = array<i64: 1, 1, 32>}, {transform_indices = @transform_7, window_bounds = array<i64: 1, 1, 32>}, {transform_indices = @transform_8, window_bounds = array<i64: 1, 32, 128>}, {transform_indices = @transform_9, window_bounds = array<i64: 1, 1, 128>}, {transform_indices = @transform_10, window_bounds = array<i64: 1, 128, 32>}, {transform_indices = @transform_11, window_bounds = array<i64: 1, 1, 32>}, {transform_indices = @transform_12, window_bounds = array<i64: 1, 1, 32>}, {transform_indices = @transform_13, window_bounds = array<i64: 1, 1, 32>}, {transform_indices = @transform_14, window_bounds = array<i64: 2, 8, 32>}]} {
    %c0_i32 = arith.constant 0 : i32
    %0 = arith.cmpi eq, %arg1, %c0_i32 : i32
    %1 = arith.extui %0 : i1 to i32
    %c0_i32_0 = arith.constant 0 : i32
    %2 = arith.cmpi ne, %1, %c0_i32_0 : i32
    scf.if %2 {
      %c0_74 = arith.constant 0 : index
      %c0_75 = arith.constant 0 : index
      %c0_76 = arith.constant 0 : index
      %170 = vector.load %arg2[%c0_74, %c0_75, %c0_76] : memref<2x8x32xf32, #tpu.memory_space<vmem>>, vector<2x8x32xf32>
      %c0_77 = arith.constant 0 : index
      %c0_78 = arith.constant 0 : index
      %c0_79 = arith.constant 0 : index
      %171 = vector.load %arg17[%c0_77, %c0_78, %c0_79] : memref<2x8x32xf32, #tpu.memory_space<vmem>>, vector<2x8x32xf32>
      tpu.vector_store %arg17[%c0_77, %c0_78, %c0_79], %170 {strides = array<i32>} : memref<2x8x32xf32, #tpu.memory_space<vmem>>, vector<2x8x32xf32>,
    } else {
    }
    %c0 = arith.constant 0 : index
    %c0_1 = arith.constant 0 : index
    %c0_2 = arith.constant 0 : index
    %3 = vector.load %arg17[%c0, %c0_1, %c0_2] : memref<2x8x32xf32, #tpu.memory_space<vmem>>, vector<2x8x32xf32>
    %c0_3 = arith.constant 0 : index
    %c0_4 = arith.constant 0 : index
    %c0_5 = arith.constant 0 : index
    %4 = vector.load %arg3[%c0_3, %c0_4, %c0_5] : memref<2x1x8xf32, #tpu.memory_space<vmem>>, vector<2x1x8xf32>
    %c0_6 = arith.constant 0 : index
    %c0_7 = arith.constant 0 : index
    %c0_8 = arith.constant 0 : index
    %5 = vector.load %arg4[%c0_6, %c0_7, %c0_8] : memref<1x32x96xbf16, #tpu.memory_space<vmem>>, vector<1x32x96xbf16>
    %6 = vector.shape_cast %5 : vector<1x32x96xbf16> to vector<32x96xbf16>
    %c0_9 = arith.constant 0 : index
    %c0_10 = arith.constant 0 : index
    %c0_11 = arith.constant 0 : index
    %7 = vector.load %arg5[%c0_9, %c0_10, %c0_11] : memref<1x1x96xf32, #tpu.memory_space<vmem>>, vector<1x1x96xf32>
    %8 = vector.shape_cast %7 : vector<1x1x96xf32> to vector<1x96xf32>
    %c0_12 = arith.constant 0 : index
    %c0_13 = arith.constant 0 : index
    %c0_14 = arith.constant 0 : index
    %9 = vector.load %arg6[%c0_12, %c0_13, %c0_14] : memref<1x32x32xbf16, #tpu.memory_space<vmem>>, vector<1x32x32xbf16>
    %10 = vector.shape_cast %9 : vector<1x32x32xbf16> to vector<32x32xbf16>
    %c0_15 = arith.constant 0 : index
    %c0_16 = arith.constant 0 : index
    %c0_17 = arith.constant 0 : index
    %11 = vector.load %arg7[%c0_15, %c0_16, %c0_17] : memref<1x1x32xf32, #tpu.memory_space<vmem>>, vector<1x1x32xf32>
    %12 = vector.shape_cast %11 : vector<1x1x32xf32> to vector<1x32xf32>
    %c0_18 = arith.constant 0 : index
    %c0_19 = arith.constant 0 : index
    %c0_20 = arith.constant 0 : index
    %13 = vector.load %arg8[%c0_18, %c0_19, %c0_20] : memref<1x1x32xf32, #tpu.memory_space<vmem>>, vector<1x1x32xf32>
    %14 = vector.shape_cast %13 : vector<1x1x32xf32> to vector<1x32xf32>
    %c0_21 = arith.constant 0 : index
    %c0_22 = arith.constant 0 : index
    %c0_23 = arith.constant 0 : index
    %15 = vector.load %arg9[%c0_21, %c0_22, %c0_23] : memref<1x1x32xf32, #tpu.memory_space<vmem>>, vector<1x1x32xf32>
    %16 = vector.shape_cast %15 : vector<1x1x32xf32> to vector<1x32xf32>
    %c0_24 = arith.constant 0 : index
    %c0_25 = arith.constant 0 : index
    %c0_26 = arith.constant 0 : index
    %17 = vector.load %arg10[%c0_24, %c0_25, %c0_26] : memref<1x32x128xbf16, #tpu.memory_space<vmem>>, vector<1x32x128xbf16>
    %18 = vector.shape_cast %17 : vector<1x32x128xbf16> to vector<32x128xbf16>
    %c0_27 = arith.constant 0 : index
    %c0_28 = arith.constant 0 : index
    %c0_29 = arith.constant 0 : index
    %19 = vector.load %arg11[%c0_27, %c0_28, %c0_29] : memref<1x1x128xf32, #tpu.memory_space<vmem>>, vector<1x1x128xf32>
    %20 = vector.shape_cast %19 : vector<1x1x128xf32> to vector<1x128xf32>
    %c0_30 = arith.constant 0 : index
    %c0_31 = arith.constant 0 : index
    %c0_32 = arith.constant 0 : index
    %21 = vector.load %arg12[%c0_30, %c0_31, %c0_32] : memref<1x128x32xbf16, #tpu.memory_space<vmem>>, vector<1x128x32xbf16>
    %22 = vector.shape_cast %21 : vector<1x128x32xbf16> to vector<128x32xbf16>
    %c0_33 = arith.constant 0 : index
    %c0_34 = arith.constant 0 : index
    %c0_35 = arith.constant 0 : index
    %23 = vector.load %arg13[%c0_33, %c0_34, %c0_35] : memref<1x1x32xf32, #tpu.memory_space<vmem>>, vector<1x1x32xf32>
    %24 = vector.shape_cast %23 : vector<1x1x32xf32> to vector<1x32xf32>
    %c0_36 = arith.constant 0 : index
    %c0_37 = arith.constant 0 : index
    %c0_38 = arith.constant 0 : index
    %25 = vector.load %arg14[%c0_36, %c0_37, %c0_38] : memref<1x1x32xf32, #tpu.memory_space<vmem>>, vector<1x1x32xf32>
    %26 = vector.shape_cast %25 : vector<1x1x32xf32> to vector<1x32xf32>
    %c0_39 = arith.constant 0 : index
    %c0_40 = arith.constant 0 : index
    %c0_41 = arith.constant 0 : index
    %27 = vector.load %arg15[%c0_39, %c0_40, %c0_41] : memref<1x1x32xf32, #tpu.memory_space<vmem>>, vector<1x1x32xf32>
    %28 = vector.shape_cast %27 : vector<1x1x32xf32> to vector<1x32xf32>
    %29 = vector.shape_cast %3 : vector<2x8x32xf32> to vector<16x32xf32>
    %30 = arith.truncf %29 : vector<16x32xf32> to vector<16x32xbf16>
    %cst = arith.constant dense<0.000000e+00> : vector<16x96xf32>
    %31 = tpu.matmul %30, %6, %cst {dimension_numbers = #tpu.dot_dimension_numbers<[1], [0], [0], [1], [0, 0, 1, 1], [], []>} : vector<16x32xbf16>, vector<32x96xbf16>, vector<16x96xf32> -> vector<16x96xf32>
    %32 = vector.broadcast %8 : vector<1x96xf32> to vector<16x96xf32>
    %33 = arith.addf %31, %32 : vector<16x96xf32>
    %34 = vector.extract_strided_slice %33 {offsets = [0, 0], sizes = [16, 32], strides = [1, 1]} : vector<16x96xf32> to vector<16x32xf32>
    %35 = vector.shape_cast %34 : vector<16x32xf32> to vector<2x8x32xf32>
    %36 = vector.extract_strided_slice %33 {offsets = [0, 32], sizes = [16, 32], strides = [1, 1]} : vector<16x96xf32> to vector<16x32xf32>
    %37 = vector.shape_cast %36 : vector<16x32xf32> to vector<2x8x32xf32>
    %38 = vector.extract_strided_slice %33 {offsets = [0, 64], sizes = [16, 32], strides = [1, 1]} : vector<16x96xf32> to vector<16x32xf32>
    %39 = vector.shape_cast %38 : vector<16x32xf32> to vector<2x8x32xf32>
    %40 = tpu.iota {dimensions = array<i32: 0>} : vector<8x8xi32>
    %41 = tpu.iota {dimensions = array<i32: 1>} : vector<8x8xi32>
    %42 = arith.cmpi sle, %41, %40 : vector<8x8xi32>
    %43 = arith.extui %42 : vector<8x8xi1> to vector<8x8xi32>
    %44 = arith.sitofp %43 : vector<8x8xi32> to vector<8x8xf32>
    %45 = vector.shape_cast %44 : vector<8x8xf32> to vector<1x8x8xf32>
    %46 = vector.broadcast %4 : vector<2x1x8xf32> to vector<2x8x8xf32>
    %47 = vector.broadcast %45 : vector<1x8x8xf32> to vector<2x8x8xf32>
    %48 = arith.mulf %46, %47 : vector<2x8x8xf32>
    %cst_42 = arith.constant 1.000000e+00 : f32
    %49 = vector.broadcast %cst_42 : f32 to vector<2x8x8xf32>
    %50 = arith.subf %49, %48 : vector<2x8x8xf32>
    %cst_43 = arith.constant -1.000000e+04 : f32
    %51 = vector.broadcast %cst_43 : f32 to vector<2x8x8xf32>
    %52 = arith.mulf %50, %51 : vector<2x8x8xf32>
    %53 = vector.extract_strided_slice %35 {offsets = [0, 0, 0], sizes = [2, 8, 16], strides = [1, 1, 1]} : vector<2x8x32xf32> to vector<2x8x16xf32>
    %54 = arith.truncf %53 : vector<2x8x16xf32> to vector<2x8x16xbf16>
    %55 = vector.extract_strided_slice %37 {offsets = [0, 0, 0], sizes = [2, 8, 16], strides = [1, 1, 1]} : vector<2x8x32xf32> to vector<2x8x16xf32>
    %56 = arith.truncf %55 : vector<2x8x16xf32> to vector<2x8x16xbf16>
    %57 = vector.extract_strided_slice %39 {offsets = [0, 0, 0], sizes = [2, 8, 16], strides = [1, 1, 1]} : vector<2x8x32xf32> to vector<2x8x16xf32>
    %58 = arith.truncf %57 : vector<2x8x16xf32> to vector<2x8x16xbf16>
    "tpu.trace_start"() <{level = 10 : i32, message = "bqd,bkd->bqk"}> : () -> ()
    %cst_44 = arith.constant dense<0.000000e+00> : vector<2x8x8xf32>
    %59 = tpu.matmul %54, %56, %cst_44 {dimension_numbers = #tpu.dot_dimension_numbers<[2], [2], [1], [1], [0, 0, 0, 1, 1, 1], [0], [0]>} : vector<2x8x16xbf16>, vector<2x8x16xbf16>, vector<2x8x8xf32> -> vector<2x8x8xf32>
    "tpu.trace_stop"() : () -> ()
    %cst_45 = arith.constant 2.500000e-01 : f32
    %60 = vector.broadcast %cst_45 : f32 to vector<2x8x8xf32>
    %61 = arith.mulf %59, %60 : vector<2x8x8xf32>
    %62 = arith.addf %61, %52 : vector<2x8x8xf32>
    %cst_46 = arith.constant dense<0xFF800000> : vector<2x8xf32>
    %63 = vector.multi_reduction <maximumf>, %62, %cst_46 [2] : vector<2x8x8xf32> to vector<2x8xf32>
    %64 = vector.shape_cast %63 : vector<2x8xf32> to vector<2x8x1xf32>
    %65 = vector.broadcast %64 : vector<2x8x1xf32> to vector<2x8x8xf32>
    %66 = arith.subf %62, %65 : vector<2x8x8xf32>
    %67 = math.exp %66 : vector<2x8x8xf32>
    %cst_47 = arith.constant dense<0.000000e+00> : vector<2x8xf32>
    %68 = vector.multi_reduction <add>, %67, %cst_47 [2] : vector<2x8x8xf32> to vector<2x8xf32>
    %69 = vector.shape_cast %68 : vector<2x8xf32> to vector<2x8x1xf32>
    %70 = tpu.reciprocal %69 {approx = true} : vector<2x8x1xf32> -> vector<2x8x1xf32>
    %71 = vector.broadcast %70 : vector<2x8x1xf32> to vector<2x8x8xf32>
    %72 = arith.mulf %67, %71 : vector<2x8x8xf32>
    %73 = arith.truncf %72 : vector<2x8x8xf32> to vector<2x8x8xbf16>
    "tpu.trace_start"() <{level = 10 : i32, message = "bqk,bkd->bqd"}> : () -> ()
    %cst_48 = arith.constant dense<0.000000e+00> : vector<2x8x16xf32>
    %74 = tpu.matmul %73, %58, %cst_48 {dimension_numbers = #tpu.dot_dimension_numbers<[2], [1], [1], [2], [0, 0, 0, 1, 1, 2], [0], [0]>} : vector<2x8x8xbf16>, vector<2x8x16xbf16>, vector<2x8x16xf32> -> vector<2x8x16xf32>
    "tpu.trace_stop"() : () -> ()
    %75 = vector.extract_strided_slice %35 {offsets = [0, 0, 16], sizes = [2, 8, 16], strides = [1, 1, 1]} : vector<2x8x32xf32> to vector<2x8x16xf32>
    %76 = arith.truncf %75 : vector<2x8x16xf32> to vector<2x8x16xbf16>
    %77 = vector.extract_strided_slice %37 {offsets = [0, 0, 16], sizes = [2, 8, 16], strides = [1, 1, 1]} : vector<2x8x32xf32> to vector<2x8x16xf32>
    %78 = arith.truncf %77 : vector<2x8x16xf32> to vector<2x8x16xbf16>
    %79 = vector.extract_strided_slice %39 {offsets = [0, 0, 16], sizes = [2, 8, 16], strides = [1, 1, 1]} : vector<2x8x32xf32> to vector<2x8x16xf32>
    %80 = arith.truncf %79 : vector<2x8x16xf32> to vector<2x8x16xbf16>
    "tpu.trace_start"() <{level = 10 : i32, message = "bqd,bkd->bqk"}> : () -> ()
    %cst_49 = arith.constant dense<0.000000e+00> : vector<2x8x8xf32>
    %81 = tpu.matmul %76, %78, %cst_49 {dimension_numbers = #tpu.dot_dimension_numbers<[2], [2], [1], [1], [0, 0, 0, 1, 1, 1], [0], [0]>} : vector<2x8x16xbf16>, vector<2x8x16xbf16>, vector<2x8x8xf32> -> vector<2x8x8xf32>
    "tpu.trace_stop"() : () -> ()
    %cst_50 = arith.constant 2.500000e-01 : f32
    %82 = vector.broadcast %cst_50 : f32 to vector<2x8x8xf32>
    %83 = arith.mulf %81, %82 : vector<2x8x8xf32>
    %84 = arith.addf %83, %52 : vector<2x8x8xf32>
    %cst_51 = arith.constant dense<0xFF800000> : vector<2x8xf32>
    %85 = vector.multi_reduction <maximumf>, %84, %cst_51 [2] : vector<2x8x8xf32> to vector<2x8xf32>
    %86 = vector.shape_cast %85 : vector<2x8xf32> to vector<2x8x1xf32>
    %87 = vector.broadcast %86 : vector<2x8x1xf32> to vector<2x8x8xf32>
    %88 = arith.subf %84, %87 : vector<2x8x8xf32>
    %89 = math.exp %88 : vector<2x8x8xf32>
    %cst_52 = arith.constant dense<0.000000e+00> : vector<2x8xf32>
    %90 = vector.multi_reduction <add>, %89, %cst_52 [2] : vector<2x8x8xf32> to vector<2x8xf32>
    %91 = vector.shape_cast %90 : vector<2x8xf32> to vector<2x8x1xf32>
    %92 = tpu.reciprocal %91 {approx = true} : vector<2x8x1xf32> -> vector<2x8x1xf32>
    %93 = vector.broadcast %92 : vector<2x8x1xf32> to vector<2x8x8xf32>
    %94 = arith.mulf %89, %93 : vector<2x8x8xf32>
    %95 = arith.truncf %94 : vector<2x8x8xf32> to vector<2x8x8xbf16>
    "tpu.trace_start"() <{level = 10 : i32, message = "bqk,bkd->bqd"}> : () -> ()
    %cst_53 = arith.constant dense<0.000000e+00> : vector<2x8x16xf32>
    %96 = tpu.matmul %95, %80, %cst_53 {dimension_numbers = #tpu.dot_dimension_numbers<[2], [1], [1], [2], [0, 0, 0, 1, 1, 2], [0], [0]>} : vector<2x8x8xbf16>, vector<2x8x16xbf16>, vector<2x8x16xf32> -> vector<2x8x16xf32>
    "tpu.trace_stop"() : () -> ()
    %97 = tpu.concatenate %74, %96 in 2 : vector<2x8x16xf32>, vector<2x8x16xf32> -> vector<2x8x32xf32>
    %98 = vector.shape_cast %97 : vector<2x8x32xf32> to vector<16x32xf32>
    %99 = arith.truncf %98 : vector<16x32xf32> to vector<16x32xbf16>
    %cst_54 = arith.constant dense<0.000000e+00> : vector<16x32xf32>
    %100 = tpu.matmul %99, %10, %cst_54 {dimension_numbers = #tpu.dot_dimension_numbers<[1], [0], [0], [1], [0, 0, 1, 1], [], []>} : vector<16x32xbf16>, vector<32x32xbf16>, vector<16x32xf32> -> vector<16x32xf32>
    %101 = vector.broadcast %12 : vector<1x32xf32> to vector<16x32xf32>
    %102 = arith.addf %100, %101 : vector<16x32xf32>
    %103 = arith.addf %102, %29 : vector<16x32xf32>
    %cst_55 = arith.constant dense<0.000000e+00> : vector<16xf32>
    %104 = vector.multi_reduction <add>, %103, %cst_55 [1] : vector<16x32xf32> to vector<16xf32>
    %105 = vector.shape_cast %104 : vector<16xf32> to vector<16x1xf32>
    %cst_56 = arith.constant 3.200000e+01 : f32
    %106 = vector.broadcast %cst_56 : f32 to vector<16x1xf32>
    %107 = arith.divf %105, %106 : vector<16x1xf32>
    %108 = vector.broadcast %107 : vector<16x1xf32> to vector<16x32xf32>
    %109 = arith.subf %103, %108 : vector<16x32xf32>
    %110 = arith.mulf %109, %109 : vector<16x32xf32>
    %cst_57 = arith.constant dense<0.000000e+00> : vector<16xf32>
    %111 = vector.multi_reduction <add>, %110, %cst_57 [1] : vector<16x32xf32> to vector<16xf32>
    %112 = vector.shape_cast %111 : vector<16xf32> to vector<16x1xf32>
    %cst_58 = arith.constant 3.200000e+01 : f32
    %113 = vector.broadcast %cst_58 : f32 to vector<16x1xf32>
    %114 = arith.divf %112, %113 : vector<16x1xf32>
    %115 = vector.broadcast %107 : vector<16x1xf32> to vector<16x32xf32>
    %116 = arith.subf %103, %115 : vector<16x32xf32>
    %cst_59 = arith.constant 9.99999996E-13 : f32
    %117 = vector.broadcast %cst_59 : f32 to vector<16x1xf32>
    %118 = arith.addf %114, %117 : vector<16x1xf32>
    %119 = math.sqrt %118 : vector<16x1xf32>
    %120 = vector.broadcast %119 : vector<16x1xf32> to vector<16x32xf32>
    %121 = arith.divf %116, %120 : vector<16x32xf32>
    %122 = vector.broadcast %14 : vector<1x32xf32> to vector<16x32xf32>
    %123 = arith.mulf %121, %122 : vector<16x32xf32>
    %124 = vector.broadcast %16 : vector<1x32xf32> to vector<16x32xf32>
    %125 = arith.addf %123, %124 : vector<16x32xf32>
    %126 = arith.truncf %125 : vector<16x32xf32> to vector<16x32xbf16>
    %cst_60 = arith.constant dense<0.000000e+00> : vector<16x128xf32>
    %127 = tpu.matmul %126, %18, %cst_60 {dimension_numbers = #tpu.dot_dimension_numbers<[1], [0], [0], [1], [0, 0, 1, 1], [], []>} : vector<16x32xbf16>, vector<32x128xbf16>, vector<16x128xf32> -> vector<16x128xf32>
    %128 = vector.broadcast %20 : vector<1x128xf32> to vector<16x128xf32>
    %129 = arith.addf %127, %128 : vector<16x128xf32>
    %cst_61 = arith.constant 5.000000e-01 : f32
    %130 = vector.broadcast %cst_61 : f32 to vector<16x128xf32>
    %131 = arith.mulf %129, %130 : vector<16x128xf32>
    %cst_62 = arith.constant 1.41421354 : f32
    %132 = vector.broadcast %cst_62 : f32 to vector<16x128xf32>
    %133 = arith.divf %129, %132 : vector<16x128xf32>
    %134 = math.erf %133 : vector<16x128xf32>
    %cst_63 = arith.constant 1.000000e+00 : f32
    %135 = vector.broadcast %cst_63 : f32 to vector<16x128xf32>
    %136 = arith.addf %135, %134 : vector<16x128xf32>
    %137 = arith.mulf %131, %136 : vector<16x128xf32>
    %138 = arith.truncf %137 : vector<16x128xf32> to vector<16x128xbf16>
    %cst_64 = arith.constant dense<0.000000e+00> : vector<16x32xf32>
    %139 = tpu.matmul %138, %22, %cst_64 {dimension_numbers = #tpu.dot_dimension_numbers<[1], [0], [0], [1], [0, 0, 1, 1], [], []>} : vector<16x128xbf16>, vector<128x32xbf16>, vector<16x32xf32> -> vector<16x32xf32>
    %140 = vector.broadcast %24 : vector<1x32xf32> to vector<16x32xf32>
    %141 = arith.addf %139, %140 : vector<16x32xf32>
    %142 = arith.addf %141, %125 : vector<16x32xf32>
    %cst_65 = arith.constant dense<0.000000e+00> : vector<16xf32>
    %143 = vector.multi_reduction <add>, %142, %cst_65 [1] : vector<16x32xf32> to vector<16xf32>
    %144 = vector.shape_cast %143 : vector<16xf32> to vector<16x1xf32>
    %cst_66 = arith.constant 3.200000e+01 : f32
    %145 = vector.broadcast %cst_66 : f32 to vector<16x1xf32>
    %146 = arith.divf %144, %145 : vector<16x1xf32>
    %147 = vector.broadcast %146 : vector<16x1xf32> to vector<16x32xf32>
    %148 = arith.subf %142, %147 : vector<16x32xf32>
    %149 = arith.mulf %148, %148 : vector<16x32xf32>
    %cst_67 = arith.constant dense<0.000000e+00> : vector<16xf32>
    %150 = vector.multi_reduction <add>, %149, %cst_67 [1] : vector<16x32xf32> to vector<16xf32>
    %151 = vector.shape_cast %150 : vector<16xf32> to vector<16x1xf32>
    %cst_68 = arith.constant 3.200000e+01 : f32
    %152 = vector.broadcast %cst_68 : f32 to vector<16x1xf32>
    %153 = arith.divf %151, %152 : vector<16x1xf32>
    %154 = vector.broadcast %146 : vector<16x1xf32> to vector<16x32xf32>
    %155 = arith.subf %142, %154 : vector<16x32xf32>
    %cst_69 = arith.constant 9.99999996E-13 : f32
    %156 = vector.broadcast %cst_69 : f32 to vector<16x1xf32>
    %157 = arith.addf %153, %156 : vector<16x1xf32>
    %158 = math.sqrt %157 : vector<16x1xf32>
    %159 = vector.broadcast %158 : vector<16x1xf32> to vector<16x32xf32>
    %160 = arith.divf %155, %159 : vector<16x32xf32>
    %161 = vector.broadcast %26 : vector<1x32xf32> to vector<16x32xf32>
    %162 = arith.mulf %160, %161 : vector<16x32xf32>
    %163 = vector.broadcast %28 : vector<1x32xf32> to vector<16x32xf32>
    %164 = arith.addf %162, %163 : vector<16x32xf32>
    %165 = vector.shape_cast %164 : vector<16x32xf32> to vector<2x8x32xf32>
    %c0_70 = arith.constant 0 : index
    %c0_71 = arith.constant 0 : index
    %c0_72 = arith.constant 0 : index
    %166 = vector.load %arg17[%c0_70, %c0_71, %c0_72] : memref<2x8x32xf32, #tpu.memory_space<vmem>>, vector<2x8x32xf32>
    tpu.vector_store %arg17[%c0_70, %c0_71, %c0_72], %165 {strides = array<i32>} : memref<2x8x32xf32, #tpu.memory_space<vmem>>, vector<2x8x32xf32>,
    %c1_i32 = arith.constant 1 : i32
    %167 = arith.cmpi eq, %arg1, %c1_i32 : i32
    %168 = arith.extui %167 : i1 to i32
    %c0_i32_73 = arith.constant 0 : i32
    %169 = arith.cmpi ne, %168, %c0_i32_73 : i32
    scf.if %169 {
      %c0_74 = arith.constant 0 : index
      %c0_75 = arith.constant 0 : index
      %c0_76 = arith.constant 0 : index
      %170 = vector.load %arg16[%c0_74, %c0_75, %c0_76] : memref<2x8x32xf32, #tpu.memory_space<vmem>>, vector<2x8x32xf32>
      tpu.vector_store %arg16[%c0_74, %c0_75, %c0_76], %165 {strides = array<i32>} : memref<2x8x32xf32, #tpu.memory_space<vmem>>, vector<2x8x32xf32>,
    } else {
    }
    return
  }
  func.func @transform_0(%arg0: i32, %arg1: i32) -> (i32, i32, i32) {
    %c0_i32 = arith.constant 0 : i32
    %c0_i32_0 = arith.constant 0 : i32
    %c0_i32_1 = arith.constant 0 : i32
    return %arg0, %c0_i32, %c0_i32_0 : i32, i32, i32
  }
  func.func @transform_1(%arg0: i32, %arg1: i32) -> (i32, i32, i32) {
    %c0_i32 = arith.constant 0 : i32
    %c0_i32_0 = arith.constant 0 : i32
    %c0_i32_1 = arith.constant 0 : i32
    return %arg0, %c0_i32, %c0_i32_0 : i32, i32, i32
  }
  func.func @transform_2(%arg0: i32, %arg1: i32) -> (i32, i32, i32) {
    %c0_i32 = arith.constant 0 : i32
    %c0_i32_0 = arith.constant 0 : i32
    %c0_i32_1 = arith.constant 0 : i32
    return %arg1, %c0_i32, %c0_i32_0 : i32, i32, i32
  }
  func.func @transform_3(%arg0: i32, %arg1: i32) -> (i32, i32, i32) {
    %c0_i32 = arith.constant 0 : i32
    %c0_i32_0 = arith.constant 0 : i32
    %c0_i32_1 = arith.constant 0 : i32
    return %arg1, %c0_i32, %c0_i32_0 : i32, i32, i32
  }
  func.func @transform_4(%arg0: i32, %arg1: i32) -> (i32, i32, i32) {
    %c0_i32 = arith.constant 0 : i32
    %c0_i32_0 = arith.constant 0 : i32
    %c0_i32_1 = arith.constant 0 : i32
    return %arg1, %c0_i32, %c0_i32_0 : i32, i32, i32
  }
  func.func @transform_5(%arg0: i32, %arg1: i32) -> (i32, i32, i32) {
    %c0_i32 = arith.constant 0 : i32
    %c0_i32_0 = arith.constant 0 : i32
    %c0_i32_1 = arith.constant 0 : i32
    return %arg1, %c0_i32, %c0_i32_0 : i32, i32, i32
  }
  func.func @transform_6(%arg0: i32, %arg1: i32) -> (i32, i32, i32) {
    %c0_i32 = arith.constant 0 : i32
    %c0_i32_0 = arith.constant 0 : i32
    %c0_i32_1 = arith.constant 0 : i32
    return %arg1, %c0_i32, %c0_i32_0 : i32, i32, i32
  }
  func.func @transform_7(%arg0: i32, %arg1: i32) -> (i32, i32, i32) {
    %c0_i32 = arith.constant 0 : i32
    %c0_i32_0 = arith.constant 0 : i32
    %c0_i32_1 = arith.constant 0 : i32
    return %arg1, %c0_i32, %c0_i32_0 : i32, i32, i32
  }
  func.func @transform_8(%arg0: i32, %arg1: i32) -> (i32, i32, i32) {
    %c0_i32 = arith.constant 0 : i32
    %c0_i32_0 = arith.constant 0 : i32
    %c0_i32_1 = arith.constant 0 : i32
    return %arg1, %c0_i32, %c0_i32_0 : i32, i32, i32
  }
  func.func @transform_9(%arg0: i32, %arg1: i32) -> (i32, i32, i32) {
    %c0_i32 = arith.constant 0 : i32
    %c0_i32_0 = arith.constant 0 : i32
    %c0_i32_1 = arith.constant 0 : i32
    return %arg1, %c0_i32, %c0_i32_0 : i32, i32, i32
  }
  func.func @transform_10(%arg0: i32, %arg1: i32) -> (i32, i32, i32) {
    %c0_i32 = arith.constant 0 : i32
    %c0_i32_0 = arith.constant 0 : i32
    %c0_i32_1 = arith.constant 0 : i32
    return %arg1, %c0_i32, %c0_i32_0 : i32, i32, i32
  }
  func.func @transform_11(%arg0: i32, %arg1: i32) -> (i32, i32, i32) {
    %c0_i32 = arith.constant 0 : i32
    %c0_i32_0 = arith.constant 0 : i32
    %c0_i32_1 = arith.constant 0 : i32
    return %arg1, %c0_i32, %c0_i32_0 : i32, i32, i32
  }
  func.func @transform_12(%arg0: i32, %arg1: i32) -> (i32, i32, i32) {
    %c0_i32 = arith.constant 0 : i32
    %c0_i32_0 = arith.constant 0 : i32
    %c0_i32_1 = arith.constant 0 : i32
    return %arg1, %c0_i32, %c0_i32_0 : i32, i32, i32
  }
  func.func @transform_13(%arg0: i32, %arg1: i32) -> (i32, i32, i32) {
    %c0_i32 = arith.constant 0 : i32
    %c0_i32_0 = arith.constant 0 : i32
    %c0_i32_1 = arith.constant 0 : i32
    return %arg1, %c0_i32, %c0_i32_0 : i32, i32, i32
  }
  func.func @transform_14(%arg0: i32, %arg1: i32) -> (i32, i32, i32) {
    %c0_i32 = arith.constant 0 : i32
    %c0_i32_0 = arith.constant 0 : i32
    %c0_i32_1 = arith.constant 0 : i32
    return %arg0, %c0_i32, %c0_i32_0 : i32, i32, i32
  }
}

module attributes {stable_mosaic.version = 11 : i64} {
  func.func @decoder_stack_kernel(%arg0: i32, %arg1: i32, %arg2: memref<2x8x32xf32, #tpu.memory_space<vmem>>, %arg3: memref<2x8x32xf32, #tpu.memory_space<vmem>>, %arg4: memref<2x1x8xf32, #tpu.memory_space<vmem>>, %arg5: memref<1x32x96xbf16, #tpu.memory_space<vmem>>, %arg6: memref<1x1x96xf32, #tpu.memory_space<vmem>>, %arg7: memref<1x32x32xbf16, #tpu.memory_space<vmem>>, %arg8: memref<1x1x32xf32, #tpu.memory_space<vmem>>, %arg9: memref<1x1x32xf32, #tpu.memory_space<vmem>>, %arg10: memref<1x1x32xf32, #tpu.memory_space<vmem>>, %arg11: memref<1x32x128xbf16, #tpu.memory_space<vmem>>, %arg12: memref<1x1x128xf32, #tpu.memory_space<vmem>>, %arg13: memref<1x128x32xbf16, #tpu.memory_space<vmem>>, %arg14: memref<1x1x32xf32, #tpu.memory_space<vmem>>, %arg15: memref<1x1x32xf32, #tpu.memory_space<vmem>>, %arg16: memref<1x1x32xf32, #tpu.memory_space<vmem>>, %arg17: memref<2x8x32xf32, #tpu.memory_space<vmem>>, %arg18: memref<2x8x32xf32, #tpu.memory_space<vmem>>, %arg19: memref<2x8x32xf32, #tpu.memory_space<vmem>>) attributes {dimension_semantics = [#tpu.dimension_semantics<parallel>, #tpu.dimension_semantics<arbitrary>], iteration_bounds = array<i64: 1, 2>, scalar_prefetch = 0 : i64, scratch_operands = 1 : i64, tpu.core_type = #tpu.core_type<tc>, window_params = [{transform_indices = @transform_0, window_bounds = array<i64: 2, 8, 32>}, {transform_indices = @transform_1, window_bounds = array<i64: 2, 8, 32>}, {transform_indices = @transform_2, window_bounds = array<i64: 2, 1, 8>}, {transform_indices = @transform_3, window_bounds = array<i64: 1, 32, 96>}, {transform_indices = @transform_4, window_bounds = array<i64: 1, 1, 96>}, {transform_indices = @transform_5, window_bounds = array<i64: 1, 32, 32>}, {transform_indices = @transform_6, window_bounds = array<i64: 1, 1, 32>}, {transform_indices = @transform_7, window_bounds = array<i64: 1, 1, 32>}, {transform_indices = @transform_8, window_bounds = array<i64: 1, 1, 32>}, {transform_indices = @transform_9, window_bounds = array<i64: 1, 32, 128>}, {transform_indices = @transform_10, window_bounds = array<i64: 1, 1, 128>}, {transform_indices = @transform_11, window_bounds = array<i64: 1, 128, 32>}, {transform_indices = @transform_12, window_bounds = array<i64: 1, 1, 32>}, {transform_indices = @transform_13, window_bounds = array<i64: 1, 1, 32>}, {transform_indices = @transform_14, window_bounds = array<i64: 1, 1, 32>}, {transform_indices = @transform_15, window_bounds = array<i64: 2, 8, 32>}, {transform_indices = @transform_16, window_bounds = array<i64: 2, 8, 32>}]} {
    %c0_i32 = arith.constant 0 : i32
    %0 = arith.cmpi eq, %arg1, %c0_i32 : i32
    %1 = arith.extui %0 : i1 to i32
    %c0_i32_0 = arith.constant 0 : i32
    %2 = arith.cmpi ne, %1, %c0_i32_0 : i32
    scf.if %2 {
      %c0_74 = arith.constant 0 : index
      %c0_75 = arith.constant 0 : index
      %c0_76 = arith.constant 0 : index
      %170 = vector.load %arg2[%c0_74, %c0_75, %c0_76] : memref<2x8x32xf32, #tpu.memory_space<vmem>>, vector<2x8x32xf32>
      %c0_77 = arith.constant 0 : index
      %c0_78 = arith.constant 0 : index
      %c0_79 = arith.constant 0 : index
      %171 = vector.load %arg3[%c0_77, %c0_78, %c0_79] : memref<2x8x32xf32, #tpu.memory_space<vmem>>, vector<2x8x32xf32>
      %cst_80 = arith.constant 5.000000e-01 : f32
      %172 = vector.broadcast %cst_80 : f32 to vector<2x8x32xf32>
      %173 = arith.mulf %172, %171 : vector<2x8x32xf32>
      %174 = math.exp %173 : vector<2x8x32xf32>
      %175 = arith.addf %170, %174 : vector<2x8x32xf32>
      %c0_81 = arith.constant 0 : index
      %c0_82 = arith.constant 0 : index
      %c0_83 = arith.constant 0 : index
      %176 = vector.load %arg17[%c0_81, %c0_82, %c0_83] : memref<2x8x32xf32, #tpu.memory_space<vmem>>, vector<2x8x32xf32>
      tpu.vector_store %arg17[%c0_81, %c0_82, %c0_83], %175 {strides = array<i32>} : memref<2x8x32xf32, #tpu.memory_space<vmem>>, vector<2x8x32xf32>,
      %c0_84 = arith.constant 0 : index
      %c0_85 = arith.constant 0 : index
      %c0_86 = arith.constant 0 : index
      %177 = vector.load %arg19[%c0_84, %c0_85, %c0_86] : memref<2x8x32xf32, #tpu.memory_space<vmem>>, vector<2x8x32xf32>
      tpu.vector_store %arg19[%c0_84, %c0_85, %c0_86], %175 {strides = array<i32>} : memref<2x8x32xf32, #tpu.memory_space<vmem>>, vector<2x8x32xf32>,
    } else {
    }
    %c0 = arith.constant 0 : index
    %c0_1 = arith.constant 0 : index
    %c0_2 = arith.constant 0 : index
    %3 = vector.load %arg19[%c0, %c0_1, %c0_2] : memref<2x8x32xf32, #tpu.memory_space<vmem>>, vector<2x8x32xf32>
    %c0_3 = arith.constant 0 : index
    %c0_4 = arith.constant 0 : index
    %c0_5 = arith.constant 0 : index
    %4 = vector.load %arg4[%c0_3, %c0_4, %c0_5] : memref<2x1x8xf32, #tpu.memory_space<vmem>>, vector<2x1x8xf32>
    %c0_6 = arith.constant 0 : index
    %c0_7 = arith.constant 0 : index
    %c0_8 = arith.constant 0 : index
    %5 = vector.load %arg5[%c0_6, %c0_7, %c0_8] : memref<1x32x96xbf16, #tpu.memory_space<vmem>>, vector<1x32x96xbf16>
    %6 = vector.shape_cast %5 : vector<1x32x96xbf16> to vector<32x96xbf16>
    %c0_9 = arith.constant 0 : index
    %c0_10 = arith.constant 0 : index
    %c0_11 = arith.constant 0 : index
    %7 = vector.load %arg6[%c0_9, %c0_10, %c0_11] : memref<1x1x96xf32, #tpu.memory_space<vmem>>, vector<1x1x96xf32>
    %8 = vector.shape_cast %7 : vector<1x1x96xf32> to vector<1x96xf32>
    %c0_12 = arith.constant 0 : index
    %c0_13 = arith.constant 0 : index
    %c0_14 = arith.constant 0 : index
    %9 = vector.load %arg7[%c0_12, %c0_13, %c0_14] : memref<1x32x32xbf16, #tpu.memory_space<vmem>>, vector<1x32x32xbf16>
    %10 = vector.shape_cast %9 : vector<1x32x32xbf16> to vector<32x32xbf16>
    %c0_15 = arith.constant 0 : index
    %c0_16 = arith.constant 0 : index
    %c0_17 = arith.constant 0 : index
    %11 = vector.load %arg8[%c0_15, %c0_16, %c0_17] : memref<1x1x32xf32, #tpu.memory_space<vmem>>, vector<1x1x32xf32>
    %12 = vector.shape_cast %11 : vector<1x1x32xf32> to vector<1x32xf32>
    %c0_18 = arith.constant 0 : index
    %c0_19 = arith.constant 0 : index
    %c0_20 = arith.constant 0 : index
    %13 = vector.load %arg9[%c0_18, %c0_19, %c0_20] : memref<1x1x32xf32, #tpu.memory_space<vmem>>, vector<1x1x32xf32>
    %14 = vector.shape_cast %13 : vector<1x1x32xf32> to vector<1x32xf32>
    %c0_21 = arith.constant 0 : index
    %c0_22 = arith.constant 0 : index
    %c0_23 = arith.constant 0 : index
    %15 = vector.load %arg10[%c0_21, %c0_22, %c0_23] : memref<1x1x32xf32, #tpu.memory_space<vmem>>, vector<1x1x32xf32>
    %16 = vector.shape_cast %15 : vector<1x1x32xf32> to vector<1x32xf32>
    %c0_24 = arith.constant 0 : index
    %c0_25 = arith.constant 0 : index
    %c0_26 = arith.constant 0 : index
    %17 = vector.load %arg11[%c0_24, %c0_25, %c0_26] : memref<1x32x128xbf16, #tpu.memory_space<vmem>>, vector<1x32x128xbf16>
    %18 = vector.shape_cast %17 : vector<1x32x128xbf16> to vector<32x128xbf16>
    %c0_27 = arith.constant 0 : index
    %c0_28 = arith.constant 0 : index
    %c0_29 = arith.constant 0 : index
    %19 = vector.load %arg12[%c0_27, %c0_28, %c0_29] : memref<1x1x128xf32, #tpu.memory_space<vmem>>, vector<1x1x128xf32>
    %20 = vector.shape_cast %19 : vector<1x1x128xf32> to vector<1x128xf32>
    %c0_30 = arith.constant 0 : index
    %c0_31 = arith.constant 0 : index
    %c0_32 = arith.constant 0 : index
    %21 = vector.load %arg13[%c0_30, %c0_31, %c0_32] : memref<1x128x32xbf16, #tpu.memory_space<vmem>>, vector<1x128x32xbf16>
    %22 = vector.shape_cast %21 : vector<1x128x32xbf16> to vector<128x32xbf16>
    %c0_33 = arith.constant 0 : index
    %c0_34 = arith.constant 0 : index
    %c0_35 = arith.constant 0 : index
    %23 = vector.load %arg14[%c0_33, %c0_34, %c0_35] : memref<1x1x32xf32, #tpu.memory_space<vmem>>, vector<1x1x32xf32>
    %24 = vector.shape_cast %23 : vector<1x1x32xf32> to vector<1x32xf32>
    %c0_36 = arith.constant 0 : index
    %c0_37 = arith.constant 0 : index
    %c0_38 = arith.constant 0 : index
    %25 = vector.load %arg15[%c0_36, %c0_37, %c0_38] : memref<1x1x32xf32, #tpu.memory_space<vmem>>, vector<1x1x32xf32>
    %26 = vector.shape_cast %25 : vector<1x1x32xf32> to vector<1x32xf32>
    %c0_39 = arith.constant 0 : index
    %c0_40 = arith.constant 0 : index
    %c0_41 = arith.constant 0 : index
    %27 = vector.load %arg16[%c0_39, %c0_40, %c0_41] : memref<1x1x32xf32, #tpu.memory_space<vmem>>, vector<1x1x32xf32>
    %28 = vector.shape_cast %27 : vector<1x1x32xf32> to vector<1x32xf32>
    %29 = vector.shape_cast %3 : vector<2x8x32xf32> to vector<16x32xf32>
    %30 = arith.truncf %29 : vector<16x32xf32> to vector<16x32xbf16>
    %cst = arith.constant dense<0.000000e+00> : vector<16x96xf32>
    %31 = tpu.matmul %30, %6, %cst {dimension_numbers = #tpu.dot_dimension_numbers<[1], [0], [0], [1], [0, 0, 1, 1], [], []>} : vector<16x32xbf16>, vector<32x96xbf16>, vector<16x96xf32> -> vector<16x96xf32>
    %32 = vector.broadcast %8 : vector<1x96xf32> to vector<16x96xf32>
    %33 = arith.addf %31, %32 : vector<16x96xf32>
    %34 = vector.extract_strided_slice %33 {offsets = [0, 0], sizes = [16, 32], strides = [1, 1]} : vector<16x96xf32> to vector<16x32xf32>
    %35 = vector.shape_cast %34 : vector<16x32xf32> to vector<2x8x32xf32>
    %36 = vector.extract_strided_slice %33 {offsets = [0, 32], sizes = [16, 32], strides = [1, 1]} : vector<16x96xf32> to vector<16x32xf32>
    %37 = vector.shape_cast %36 : vector<16x32xf32> to vector<2x8x32xf32>
    %38 = vector.extract_strided_slice %33 {offsets = [0, 64], sizes = [16, 32], strides = [1, 1]} : vector<16x96xf32> to vector<16x32xf32>
    %39 = vector.shape_cast %38 : vector<16x32xf32> to vector<2x8x32xf32>
    %40 = tpu.iota {dimensions = array<i32: 0>} : vector<8x8xi32>
    %41 = tpu.iota {dimensions = array<i32: 1>} : vector<8x8xi32>
    %42 = arith.cmpi sle, %41, %40 : vector<8x8xi32>
    %43 = arith.extui %42 : vector<8x8xi1> to vector<8x8xi32>
    %44 = arith.sitofp %43 : vector<8x8xi32> to vector<8x8xf32>
    %45 = vector.shape_cast %44 : vector<8x8xf32> to vector<1x8x8xf32>
    %46 = vector.broadcast %4 : vector<2x1x8xf32> to vector<2x8x8xf32>
    %47 = vector.broadcast %45 : vector<1x8x8xf32> to vector<2x8x8xf32>
    %48 = arith.mulf %46, %47 : vector<2x8x8xf32>
    %cst_42 = arith.constant 1.000000e+00 : f32
    %49 = vector.broadcast %cst_42 : f32 to vector<2x8x8xf32>
    %50 = arith.subf %49, %48 : vector<2x8x8xf32>
    %cst_43 = arith.constant -1.000000e+04 : f32
    %51 = vector.broadcast %cst_43 : f32 to vector<2x8x8xf32>
    %52 = arith.mulf %50, %51 : vector<2x8x8xf32>
    %53 = vector.extract_strided_slice %35 {offsets = [0, 0, 0], sizes = [2, 8, 16], strides = [1, 1, 1]} : vector<2x8x32xf32> to vector<2x8x16xf32>
    %54 = arith.truncf %53 : vector<2x8x16xf32> to vector<2x8x16xbf16>
    %55 = vector.extract_strided_slice %37 {offsets = [0, 0, 0], sizes = [2, 8, 16], strides = [1, 1, 1]} : vector<2x8x32xf32> to vector<2x8x16xf32>
    %56 = arith.truncf %55 : vector<2x8x16xf32> to vector<2x8x16xbf16>
    %57 = vector.extract_strided_slice %39 {offsets = [0, 0, 0], sizes = [2, 8, 16], strides = [1, 1, 1]} : vector<2x8x32xf32> to vector<2x8x16xf32>
    %58 = arith.truncf %57 : vector<2x8x16xf32> to vector<2x8x16xbf16>
    "tpu.trace_start"() <{level = 10 : i32, message = "bqd,bkd->bqk"}> : () -> ()
    %cst_44 = arith.constant dense<0.000000e+00> : vector<2x8x8xf32>
    %59 = tpu.matmul %54, %56, %cst_44 {dimension_numbers = #tpu.dot_dimension_numbers<[2], [2], [1], [1], [0, 0, 0, 1, 1, 1], [0], [0]>} : vector<2x8x16xbf16>, vector<2x8x16xbf16>, vector<2x8x8xf32> -> vector<2x8x8xf32>
    "tpu.trace_stop"() : () -> ()
    %cst_45 = arith.constant 2.500000e-01 : f32
    %60 = vector.broadcast %cst_45 : f32 to vector<2x8x8xf32>
    %61 = arith.mulf %59, %60 : vector<2x8x8xf32>
    %62 = arith.addf %61, %52 : vector<2x8x8xf32>
    %cst_46 = arith.constant dense<0xFF800000> : vector<2x8xf32>
    %63 = vector.multi_reduction <maximumf>, %62, %cst_46 [2] : vector<2x8x8xf32> to vector<2x8xf32>
    %64 = vector.shape_cast %63 : vector<2x8xf32> to vector<2x8x1xf32>
    %65 = vector.broadcast %64 : vector<2x8x1xf32> to vector<2x8x8xf32>
    %66 = arith.subf %62, %65 : vector<2x8x8xf32>
    %67 = math.exp %66 : vector<2x8x8xf32>
    %cst_47 = arith.constant dense<0.000000e+00> : vector<2x8xf32>
    %68 = vector.multi_reduction <add>, %67, %cst_47 [2] : vector<2x8x8xf32> to vector<2x8xf32>
    %69 = vector.shape_cast %68 : vector<2x8xf32> to vector<2x8x1xf32>
    %70 = tpu.reciprocal %69 {approx = true} : vector<2x8x1xf32> -> vector<2x8x1xf32>
    %71 = vector.broadcast %70 : vector<2x8x1xf32> to vector<2x8x8xf32>
    %72 = arith.mulf %67, %71 : vector<2x8x8xf32>
    %73 = arith.truncf %72 : vector<2x8x8xf32> to vector<2x8x8xbf16>
    "tpu.trace_start"() <{level = 10 : i32, message = "bqk,bkd->bqd"}> : () -> ()
    %cst_48 = arith.constant dense<0.000000e+00> : vector<2x8x16xf32>
    %74 = tpu.matmul %73, %58, %cst_48 {dimension_numbers = #tpu.dot_dimension_numbers<[2], [1], [1], [2], [0, 0, 0, 1, 1, 2], [0], [0]>} : vector<2x8x8xbf16>, vector<2x8x16xbf16>, vector<2x8x16xf32> -> vector<2x8x16xf32>
    "tpu.trace_stop"() : () -> ()
    %75 = vector.extract_strided_slice %35 {offsets = [0, 0, 16], sizes = [2, 8, 16], strides = [1, 1, 1]} : vector<2x8x32xf32> to vector<2x8x16xf32>
    %76 = arith.truncf %75 : vector<2x8x16xf32> to vector<2x8x16xbf16>
    %77 = vector.extract_strided_slice %37 {offsets = [0, 0, 16], sizes = [2, 8, 16], strides = [1, 1, 1]} : vector<2x8x32xf32> to vector<2x8x16xf32>
    %78 = arith.truncf %77 : vector<2x8x16xf32> to vector<2x8x16xbf16>
    %79 = vector.extract_strided_slice %39 {offsets = [0, 0, 16], sizes = [2, 8, 16], strides = [1, 1, 1]} : vector<2x8x32xf32> to vector<2x8x16xf32>
    %80 = arith.truncf %79 : vector<2x8x16xf32> to vector<2x8x16xbf16>
    "tpu.trace_start"() <{level = 10 : i32, message = "bqd,bkd->bqk"}> : () -> ()
    %cst_49 = arith.constant dense<0.000000e+00> : vector<2x8x8xf32>
    %81 = tpu.matmul %76, %78, %cst_49 {dimension_numbers = #tpu.dot_dimension_numbers<[2], [2], [1], [1], [0, 0, 0, 1, 1, 1], [0], [0]>} : vector<2x8x16xbf16>, vector<2x8x16xbf16>, vector<2x8x8xf32> -> vector<2x8x8xf32>
    "tpu.trace_stop"() : () -> ()
    %cst_50 = arith.constant 2.500000e-01 : f32
    %82 = vector.broadcast %cst_50 : f32 to vector<2x8x8xf32>
    %83 = arith.mulf %81, %82 : vector<2x8x8xf32>
    %84 = arith.addf %83, %52 : vector<2x8x8xf32>
    %cst_51 = arith.constant dense<0xFF800000> : vector<2x8xf32>
    %85 = vector.multi_reduction <maximumf>, %84, %cst_51 [2] : vector<2x8x8xf32> to vector<2x8xf32>
    %86 = vector.shape_cast %85 : vector<2x8xf32> to vector<2x8x1xf32>
    %87 = vector.broadcast %86 : vector<2x8x1xf32> to vector<2x8x8xf32>
    %88 = arith.subf %84, %87 : vector<2x8x8xf32>
    %89 = math.exp %88 : vector<2x8x8xf32>
    %cst_52 = arith.constant dense<0.000000e+00> : vector<2x8xf32>
    %90 = vector.multi_reduction <add>, %89, %cst_52 [2] : vector<2x8x8xf32> to vector<2x8xf32>
    %91 = vector.shape_cast %90 : vector<2x8xf32> to vector<2x8x1xf32>
    %92 = tpu.reciprocal %91 {approx = true} : vector<2x8x1xf32> -> vector<2x8x1xf32>
    %93 = vector.broadcast %92 : vector<2x8x1xf32> to vector<2x8x8xf32>
    %94 = arith.mulf %89, %93 : vector<2x8x8xf32>
    %95 = arith.truncf %94 : vector<2x8x8xf32> to vector<2x8x8xbf16>
    "tpu.trace_start"() <{level = 10 : i32, message = "bqk,bkd->bqd"}> : () -> ()
    %cst_53 = arith.constant dense<0.000000e+00> : vector<2x8x16xf32>
    %96 = tpu.matmul %95, %80, %cst_53 {dimension_numbers = #tpu.dot_dimension_numbers<[2], [1], [1], [2], [0, 0, 0, 1, 1, 2], [0], [0]>} : vector<2x8x8xbf16>, vector<2x8x16xbf16>, vector<2x8x16xf32> -> vector<2x8x16xf32>
    "tpu.trace_stop"() : () -> ()
    %97 = tpu.concatenate %74, %96 in 2 : vector<2x8x16xf32>, vector<2x8x16xf32> -> vector<2x8x32xf32>
    %98 = vector.shape_cast %97 : vector<2x8x32xf32> to vector<16x32xf32>
    %99 = arith.truncf %98 : vector<16x32xf32> to vector<16x32xbf16>
    %cst_54 = arith.constant dense<0.000000e+00> : vector<16x32xf32>
    %100 = tpu.matmul %99, %10, %cst_54 {dimension_numbers = #tpu.dot_dimension_numbers<[1], [0], [0], [1], [0, 0, 1, 1], [], []>} : vector<16x32xbf16>, vector<32x32xbf16>, vector<16x32xf32> -> vector<16x32xf32>
    %101 = vector.broadcast %12 : vector<1x32xf32> to vector<16x32xf32>
    %102 = arith.addf %100, %101 : vector<16x32xf32>
    %103 = arith.addf %102, %29 : vector<16x32xf32>
    %cst_55 = arith.constant dense<0.000000e+00> : vector<16xf32>
    %104 = vector.multi_reduction <add>, %103, %cst_55 [1] : vector<16x32xf32> to vector<16xf32>
    %105 = vector.shape_cast %104 : vector<16xf32> to vector<16x1xf32>
    %cst_56 = arith.constant 3.200000e+01 : f32
    %106 = vector.broadcast %cst_56 : f32 to vector<16x1xf32>
    %107 = arith.divf %105, %106 : vector<16x1xf32>
    %108 = vector.broadcast %107 : vector<16x1xf32> to vector<16x32xf32>
    %109 = arith.subf %103, %108 : vector<16x32xf32>
    %110 = arith.mulf %109, %109 : vector<16x32xf32>
    %cst_57 = arith.constant dense<0.000000e+00> : vector<16xf32>
    %111 = vector.multi_reduction <add>, %110, %cst_57 [1] : vector<16x32xf32> to vector<16xf32>
    %112 = vector.shape_cast %111 : vector<16xf32> to vector<16x1xf32>
    %cst_58 = arith.constant 3.200000e+01 : f32
    %113 = vector.broadcast %cst_58 : f32 to vector<16x1xf32>
    %114 = arith.divf %112, %113 : vector<16x1xf32>
    %115 = vector.broadcast %107 : vector<16x1xf32> to vector<16x32xf32>
    %116 = arith.subf %103, %115 : vector<16x32xf32>
    %cst_59 = arith.constant 9.99999996E-13 : f32
    %117 = vector.broadcast %cst_59 : f32 to vector<16x1xf32>
    %118 = arith.addf %114, %117 : vector<16x1xf32>
    %119 = math.sqrt %118 : vector<16x1xf32>
    %120 = vector.broadcast %119 : vector<16x1xf32> to vector<16x32xf32>
    %121 = arith.divf %116, %120 : vector<16x32xf32>
    %122 = vector.broadcast %14 : vector<1x32xf32> to vector<16x32xf32>
    %123 = arith.mulf %121, %122 : vector<16x32xf32>
    %124 = vector.broadcast %16 : vector<1x32xf32> to vector<16x32xf32>
    %125 = arith.addf %123, %124 : vector<16x32xf32>
    %126 = arith.truncf %125 : vector<16x32xf32> to vector<16x32xbf16>
    %cst_60 = arith.constant dense<0.000000e+00> : vector<16x128xf32>
    %127 = tpu.matmul %126, %18, %cst_60 {dimension_numbers = #tpu.dot_dimension_numbers<[1], [0], [0], [1], [0, 0, 1, 1], [], []>} : vector<16x32xbf16>, vector<32x128xbf16>, vector<16x128xf32> -> vector<16x128xf32>
    %128 = vector.broadcast %20 : vector<1x128xf32> to vector<16x128xf32>
    %129 = arith.addf %127, %128 : vector<16x128xf32>
    %cst_61 = arith.constant 5.000000e-01 : f32
    %130 = vector.broadcast %cst_61 : f32 to vector<16x128xf32>
    %131 = arith.mulf %129, %130 : vector<16x128xf32>
    %cst_62 = arith.constant 1.41421354 : f32
    %132 = vector.broadcast %cst_62 : f32 to vector<16x128xf32>
    %133 = arith.divf %129, %132 : vector<16x128xf32>
    %134 = math.erf %133 : vector<16x128xf32>
    %cst_63 = arith.constant 1.000000e+00 : f32
    %135 = vector.broadcast %cst_63 : f32 to vector<16x128xf32>
    %136 = arith.addf %135, %134 : vector<16x128xf32>
    %137 = arith.mulf %131, %136 : vector<16x128xf32>
    %138 = arith.truncf %137 : vector<16x128xf32> to vector<16x128xbf16>
    %cst_64 = arith.constant dense<0.000000e+00> : vector<16x32xf32>
    %139 = tpu.matmul %138, %22, %cst_64 {dimension_numbers = #tpu.dot_dimension_numbers<[1], [0], [0], [1], [0, 0, 1, 1], [], []>} : vector<16x128xbf16>, vector<128x32xbf16>, vector<16x32xf32> -> vector<16x32xf32>
    %140 = vector.broadcast %24 : vector<1x32xf32> to vector<16x32xf32>
    %141 = arith.addf %139, %140 : vector<16x32xf32>
    %142 = arith.addf %141, %125 : vector<16x32xf32>
    %cst_65 = arith.constant dense<0.000000e+00> : vector<16xf32>
    %143 = vector.multi_reduction <add>, %142, %cst_65 [1] : vector<16x32xf32> to vector<16xf32>
    %144 = vector.shape_cast %143 : vector<16xf32> to vector<16x1xf32>
    %cst_66 = arith.constant 3.200000e+01 : f32
    %145 = vector.broadcast %cst_66 : f32 to vector<16x1xf32>
    %146 = arith.divf %144, %145 : vector<16x1xf32>
    %147 = vector.broadcast %146 : vector<16x1xf32> to vector<16x32xf32>
    %148 = arith.subf %142, %147 : vector<16x32xf32>
    %149 = arith.mulf %148, %148 : vector<16x32xf32>
    %cst_67 = arith.constant dense<0.000000e+00> : vector<16xf32>
    %150 = vector.multi_reduction <add>, %149, %cst_67 [1] : vector<16x32xf32> to vector<16xf32>
    %151 = vector.shape_cast %150 : vector<16xf32> to vector<16x1xf32>
    %cst_68 = arith.constant 3.200000e+01 : f32
    %152 = vector.broadcast %cst_68 : f32 to vector<16x1xf32>
    %153 = arith.divf %151, %152 : vector<16x1xf32>
    %154 = vector.broadcast %146 : vector<16x1xf32> to vector<16x32xf32>
    %155 = arith.subf %142, %154 : vector<16x32xf32>
    %cst_69 = arith.constant 9.99999996E-13 : f32
    %156 = vector.broadcast %cst_69 : f32 to vector<16x1xf32>
    %157 = arith.addf %153, %156 : vector<16x1xf32>
    %158 = math.sqrt %157 : vector<16x1xf32>
    %159 = vector.broadcast %158 : vector<16x1xf32> to vector<16x32xf32>
    %160 = arith.divf %155, %159 : vector<16x32xf32>
    %161 = vector.broadcast %26 : vector<1x32xf32> to vector<16x32xf32>
    %162 = arith.mulf %160, %161 : vector<16x32xf32>
    %163 = vector.broadcast %28 : vector<1x32xf32> to vector<16x32xf32>
    %164 = arith.addf %162, %163 : vector<16x32xf32>
    %165 = vector.shape_cast %164 : vector<16x32xf32> to vector<2x8x32xf32>
    %c0_70 = arith.constant 0 : index
    %c0_71 = arith.constant 0 : index
    %c0_72 = arith.constant 0 : index
    %166 = vector.load %arg19[%c0_70, %c0_71, %c0_72] : memref<2x8x32xf32, #tpu.memory_space<vmem>>, vector<2x8x32xf32>
    tpu.vector_store %arg19[%c0_70, %c0_71, %c0_72], %165 {strides = array<i32>} : memref<2x8x32xf32, #tpu.memory_space<vmem>>, vector<2x8x32xf32>,
    %c1_i32 = arith.constant 1 : i32
    %167 = arith.cmpi eq, %arg1, %c1_i32 : i32
    %168 = arith.extui %167 : i1 to i32
    %c0_i32_73 = arith.constant 0 : i32
    %169 = arith.cmpi ne, %168, %c0_i32_73 : i32
    scf.if %169 {
      %c0_74 = arith.constant 0 : index
      %c0_75 = arith.constant 0 : index
      %c0_76 = arith.constant 0 : index
      %170 = vector.load %arg18[%c0_74, %c0_75, %c0_76] : memref<2x8x32xf32, #tpu.memory_space<vmem>>, vector<2x8x32xf32>
      tpu.vector_store %arg18[%c0_74, %c0_75, %c0_76], %165 {strides = array<i32>} : memref<2x8x32xf32, #tpu.memory_space<vmem>>, vector<2x8x32xf32>,
    } else {
    }
    return
  }
  func.func @transform_0(%arg0: i32, %arg1: i32) -> (i32, i32, i32) {
    %c0_i32 = arith.constant 0 : i32
    %c0_i32_0 = arith.constant 0 : i32
    %c0_i32_1 = arith.constant 0 : i32
    return %arg0, %c0_i32, %c0_i32_0 : i32, i32, i32
  }
  func.func @transform_1(%arg0: i32, %arg1: i32) -> (i32, i32, i32) {
    %c0_i32 = arith.constant 0 : i32
    %c0_i32_0 = arith.constant 0 : i32
    %c0_i32_1 = arith.constant 0 : i32
    return %arg0, %c0_i32, %c0_i32_0 : i32, i32, i32
  }
  func.func @transform_2(%arg0: i32, %arg1: i32) -> (i32, i32, i32) {
    %c0_i32 = arith.constant 0 : i32
    %c0_i32_0 = arith.constant 0 : i32
    %c0_i32_1 = arith.constant 0 : i32
    return %arg0, %c0_i32, %c0_i32_0 : i32, i32, i32
  }
  func.func @transform_3(%arg0: i32, %arg1: i32) -> (i32, i32, i32) {
    %c0_i32 = arith.constant 0 : i32
    %c0_i32_0 = arith.constant 0 : i32
    %c0_i32_1 = arith.constant 0 : i32
    return %arg1, %c0_i32, %c0_i32_0 : i32, i32, i32
  }
  func.func @transform_4(%arg0: i32, %arg1: i32) -> (i32, i32, i32) {
    %c0_i32 = arith.constant 0 : i32
    %c0_i32_0 = arith.constant 0 : i32
    %c0_i32_1 = arith.constant 0 : i32
    return %arg1, %c0_i32, %c0_i32_0 : i32, i32, i32
  }
  func.func @transform_5(%arg0: i32, %arg1: i32) -> (i32, i32, i32) {
    %c0_i32 = arith.constant 0 : i32
    %c0_i32_0 = arith.constant 0 : i32
    %c0_i32_1 = arith.constant 0 : i32
    return %arg1, %c0_i32, %c0_i32_0 : i32, i32, i32
  }
  func.func @transform_6(%arg0: i32, %arg1: i32) -> (i32, i32, i32) {
    %c0_i32 = arith.constant 0 : i32
    %c0_i32_0 = arith.constant 0 : i32
    %c0_i32_1 = arith.constant 0 : i32
    return %arg1, %c0_i32, %c0_i32_0 : i32, i32, i32
  }
  func.func @transform_7(%arg0: i32, %arg1: i32) -> (i32, i32, i32) {
    %c0_i32 = arith.constant 0 : i32
    %c0_i32_0 = arith.constant 0 : i32
    %c0_i32_1 = arith.constant 0 : i32
    return %arg1, %c0_i32, %c0_i32_0 : i32, i32, i32
  }
  func.func @transform_8(%arg0: i32, %arg1: i32) -> (i32, i32, i32) {
    %c0_i32 = arith.constant 0 : i32
    %c0_i32_0 = arith.constant 0 : i32
    %c0_i32_1 = arith.constant 0 : i32
    return %arg1, %c0_i32, %c0_i32_0 : i32, i32, i32
  }
  func.func @transform_9(%arg0: i32, %arg1: i32) -> (i32, i32, i32) {
    %c0_i32 = arith.constant 0 : i32
    %c0_i32_0 = arith.constant 0 : i32
    %c0_i32_1 = arith.constant 0 : i32
    return %arg1, %c0_i32, %c0_i32_0 : i32, i32, i32
  }
  func.func @transform_10(%arg0: i32, %arg1: i32) -> (i32, i32, i32) {
    %c0_i32 = arith.constant 0 : i32
    %c0_i32_0 = arith.constant 0 : i32
    %c0_i32_1 = arith.constant 0 : i32
    return %arg1, %c0_i32, %c0_i32_0 : i32, i32, i32
  }
  func.func @transform_11(%arg0: i32, %arg1: i32) -> (i32, i32, i32) {
    %c0_i32 = arith.constant 0 : i32
    %c0_i32_0 = arith.constant 0 : i32
    %c0_i32_1 = arith.constant 0 : i32
    return %arg1, %c0_i32, %c0_i32_0 : i32, i32, i32
  }
  func.func @transform_12(%arg0: i32, %arg1: i32) -> (i32, i32, i32) {
    %c0_i32 = arith.constant 0 : i32
    %c0_i32_0 = arith.constant 0 : i32
    %c0_i32_1 = arith.constant 0 : i32
    return %arg1, %c0_i32, %c0_i32_0 : i32, i32, i32
  }
  func.func @transform_13(%arg0: i32, %arg1: i32) -> (i32, i32, i32) {
    %c0_i32 = arith.constant 0 : i32
    %c0_i32_0 = arith.constant 0 : i32
    %c0_i32_1 = arith.constant 0 : i32
    return %arg1, %c0_i32, %c0_i32_0 : i32, i32, i32
  }
  func.func @transform_14(%arg0: i32, %arg1: i32) -> (i32, i32, i32) {
    %c0_i32 = arith.constant 0 : i32
    %c0_i32_0 = arith.constant 0 : i32
    %c0_i32_1 = arith.constant 0 : i32
    return %arg1, %c0_i32, %c0_i32_0 : i32, i32, i32
  }
  func.func @transform_15(%arg0: i32, %arg1: i32) -> (i32, i32, i32) {
    %c0_i32 = arith.constant 0 : i32
    %c0_i32_0 = arith.constant 0 : i32
    %c0_i32_1 = arith.constant 0 : i32
    return %arg0, %c0_i32, %c0_i32_0 : i32, i32, i32
  }
  func.func @transform_16(%arg0: i32, %arg1: i32) -> (i32, i32, i32) {
    %c0_i32 = arith.constant 0 : i32
    %c0_i32_0 = arith.constant 0 : i32
    %c0_i32_1 = arith.constant 0 : i32
    return %arg0, %c0_i32, %c0_i32_0 : i32, i32, i32
  }
}

</mosaic_0001>

<bundles_post_ra>
// kernel: contrastvae_vd_forward.4
= control target key start
LH: loop header
LB: loop body
LE: loop exit
PB: predicated region body
PF: predicated region fallthrough
CT: control target
= control target key end

     0   :  { %vm18_vm0 = vcmask 261120   ;;  %s136_s0 = inlined_call_operand.vmem [shape: f32[2,8,32], index: 0, kind: input, shape index: {}]   ;;  %s137_s1 = inlined_call_operand.vmem [shape: f32[1,32], index: 1, kind: input, shape index: {}]   ;;  %s138_s2 = inlined_call_operand.vmem [shape: f32[1,32], index: 2, kind: input, shape index: {}]   ;;  %s139_s3 = inlined_call_operand.vmem [shape: f32[2,8,32], index: 3, kind: output, shape index: {}]  }
   0x1   :  { %v14_v0 = vld [vmem:[%s136_s0] sm:$0xff]  ;;  %v15_v1 = vld [vmem:[%s136_s0 + $0x8] sm:$0xff] }
   0x2   :  { %v19_v2 = vsel %vm18_vm0, %v14_v0, 0.0  ;;  %v22_v3 = vsel %vm18_vm0, %v15_v1, 0.0  ;;  %v82_v31 = vld [vmem:[%s137_s1] ss:$0 sm:$0xff] }
   0x3   :  { %20 = vadd.xlane.f32.xlu0 %v19_v2  ;;  %v83_v33 = vld [vmem:[%s138_s2] ss:$0 sm:$0xff] }
   0x7   :  { %23 = vadd.xlane.f32.xlu0 %v22_v3 }
  0x8c   :  { %v21_v4 = vpop.xlane.xlu0 %20 }
  0x8d   :  { %v26_v5 = vmul.f32 0.03125, %v21_v4 }
  0x8f   :  { %v28_v6 = vsub.f32 %v14_v0, %v26_v5 }
  0x90   :  { %v24_v7 = vpop.xlane.xlu0 %23 }
  0x91   :  { %v27_v8 = vmul.f32 0.03125, %v24_v7  ;;  %v30_v9 = vmul.f32 %v28_v6, %v28_v6 }
  0x93   :  { %v29_v10 = vsub.f32 %v15_v1, %v27_v8  ;;  %v32_v11 = vsel %vm18_vm0, %v30_v9, 0.0 }
  0x94   :  { %33 = vadd.xlane.f32.xlu1 %v32_v11 }
  0x95   :  { %v31_v12 = vmul.f32 %v29_v10, %v29_v10 }
  0x97   :  { %v35_v13 = vsel %vm18_vm0, %v31_v12, 0.0 }
  0x98   :  { %36 = vadd.xlane.f32.xlu1 %v35_v13 }
 0x11d   :  { %v34_v14 = vpop.xlane.xlu1 %33 }
 0x11e   :  { %v38_v15 = vmul.f32 0.03125, %v34_v14 }
 0x120   :  { %v40_v16 = vadd.f32 1e-12, %v38_v15 }
 0x121   :  { %v37_v17 = vpop.xlane.xlu1 %36 }
 0x122   :  { %84 = vrsqrt.f32 %v40_v16  ;;  %v39_v18 = vmul.f32 0.03125, %v37_v17  ;;  %vm44_vm1 = vcmp.eq.f32.partialorder %v40_v16, inf  ;;  %v47_v22 = vand.u32 2147483648, %v40_v16 }
 0x123   :  { %vm46_vm2 = vcmp.eq.f32.partialorder %v40_v16, 0.0 }
 0x124   :  { %v41_v19 = vadd.f32 1e-12, %v39_v18 }
 0x126   :  { %86 = vrsqrt.f32 %v41_v19  ;;  %vm51_vm3 = vcmp.eq.f32.partialorder %v41_v19, inf  ;;  %v54_v27 = vand.u32 2147483648, %v41_v19  ;;  %vm53_vm4 = vcmp.eq.f32.partialorder %v41_v19, 0.0 }
 0x12f   :  { %v85_v20 = vpop.eup %84 }
 0x130   :  { %v43_v21 = vmul.f32 %v85_v20, %v40_v16 }
 0x132   :  { %v45_v23 = vsel %vm44_vm1, %v40_v16, %v43_v21 }
 0x133   :  { %v48_v24 = vsel %vm46_vm2, %v47_v22, %v45_v23  ;;  %v87_v25 = vpop.eup %86 }
 0x134   :  { %88 = vrcp.f32 %v48_v24  ;;  %v50_v26 = vmul.f32 %v87_v25, %v41_v19 }
 0x136   :  { %v52_v28 = vsel %vm51_vm3, %v41_v19, %v50_v26 }
 0x137   :  { %v55_v29 = vsel %vm53_vm4, %v54_v27, %v52_v28 }
 0x138   :  { %90 = vrcp.f32 %v55_v29 }
 0x141   :  { %v89_v30 = vpop.eup %88 }
 0x142   :  { %v57_v32 = vmul.f32 %v89_v30, %v28_v6 }
 0x144   :  { %v66_v34 = vmul.f32 %v82_v31, %v57_v32 }
 0x145   :  { %v91_v35 = vpop.eup %90 }
 0x146   :  { %v74_v36 = vadd.f32 %v83_v33, %v66_v34  ;;  %v59_v37 = vmul.f32 %v91_v35, %v29_v10 }
 0x148   :  { %76 = vst.msk [vmem:[%s139_s3] sm:$0xff] %vm18_vm0, %v74_v36  ;;  %v67_v38 = vmul.f32 %v82_v31, %v59_v37 }
 0x14a   :  { %v75_v39 = vadd.f32 %v83_v33, %v67_v38 }
 0x14c   :  { %77 = vst.msk [vmem:[%s139_s3 + $0x8] sm:$0xff] %vm18_vm0, %v75_v39 }

// kernel: contrastvae_vd_forward.7
= control target key start
LH: loop header
LB: loop body
LE: loop exit
PB: predicated region body
PF: predicated region fallthrough
CT: control target
= control target key end

     0   :  { %s2394_s21 = smov 0   ;;  %s2396_s22 = smov 0   ;;  %s2693_s0 = inlined_call_operand.vmem [shape: f32[2,8,32], index: 0, kind: input, shape index: {}]   ;;  %s2694_s1 = inlined_call_operand.vmem [shape: f32[2,8,32], index: 1, kind: input, shape index: {}]   ;;  %s2695_s2 = inlined_call_operand.vmem [shape: f32[2,1,8], index: 2, kind: input, shape index: {}]   ;;  %s2696_s3 = inlined_call_operand.vmem [shape: bf16[2,32,96], index: 3, kind: input, shape index: {}]   ;;  %s2697_s4 = inlined_call_operand.vmem [shape: f32[2,1,96], index: 4, kind: input, shape index: {}]   ;;  %s2698_s5 = inlined_call_operand.vmem [shape: bf16[2,32,32], index: 5, kind: input, shape index: {}]   ;;  %s2699_s6 = inlined_call_operand.vmem [shape: f32[2,1,32], index: 6, kind: input, shape index: {}]   ;;  %s2700_s7 = inlined_call_operand.vmem [shape: f32[2,1,32], index: 7, kind: input, shape index: {}]   ;;  %s2701_s8 = inlined_call_operand.vmem [shape: f32[2,1,32], index: 8, kind: input, shape index: {}]   ;;  %s2702_s9 = inlined_call_operand.vmem [shape: bf16[2,32,128], index: 9, kind: input, shape index: {}]   ;;  %s2703_s10 = inlined_call_operand.vmem [shape: f32[2,1,128], index: 10, kind: input, shape index: {}]   ;;  %s2704_s11 = inlined_call_operand.vmem [shape: bf16[2,128,32], index: 11, kind: input, shape index: {}]   ;;  %s2705_s12 = inlined_call_operand.vmem [shape: f32[2,1,32], index: 12, kind: input, shape index: {}]   ;;  %s2706_s13 = inlined_call_operand.vmem [shape: f32[2,1,32], index: 13, kind: input, shape index: {}]   ;;  %s2707_s14 = inlined_call_operand.vmem [shape: f32[2,1,32], index: 14, kind: input, shape index: {}]   ;;  %s2708_s15 = inlined_call_operand.vmem [shape: f32[2,8,32], index: 15, kind: output, shape index: {0}]   ;;  %s2709_s16 = inlined_call_operand.vmem [shape: f32[2,8,32], index: 16, kind: output, shape index: {1}]  }
   0x1   :  { %2717 = sst [smem:[#allocation7_spill]] %s2693_s0  ;;  %s2398_s23 = smov 0  }
   0x2   :  { %2718 = sst [smem:[#allocation8_spill]] %s2695_s2 }
   0x3   :  { %2719 = sst [smem:[#allocation9_spill]] %s2696_s3 }
   0x4   :  { %2720 = sst [smem:[#allocation10_spill]] %s2698_s5 }
   0x5   :  { %2721 = sst [smem:[#allocation11_spill]] %s2708_s15 }
   0x6   :  { %2722 = sst [smem:[#allocation12_spill]] %s2709_s16 }
   0x7 LB: > { %2723 = sst [smem:[#allocation3_spill]] %s2295_s22  ;;  %s36_s24 = sadd.s32 1, %s2295_s22  ;;  %s2299_s23 = sphi %s2398_s23, %s27_s23   ;;  %s2295_s22 = sphi %s2396_s22, %s2740_s22   ;;  %s2291_s21 = sphi %s2394_s21, %s2739_s21  }
   0x8   : > { %2724 = sst [smem:[#allocation4_spill]] %s2299_s23  ;;  %p2003_p0 = scmp.ge.s32.totalorder %s2299_s23, 1 }
   0x9   : > { %p37_p1 = scmp.ge.s32.totalorder %s36_s24, 2  ;;  %p603_p2 = scmp.lt.s32.totalorder %s2299_s23, 3 }
   0xb   : > { %s2742_s24 = smov (%p37_p1, %s36_s24), 0  ;;  %p604_p3 = pnand %p2003_p0, %p603_p2 }
   0xc   : > { %2725 = sst [smem:[#allocation5_spill]] %s2742_s24 }
   0xd   : > { %607 = sbr.rel (%p604_p3) target bundleno = 3016 (0xbc8), region = 80 }
  0x12   : > { %p728_p4 = scmp.lt.s32.totalorder %s2291_s21, 1  ;;  %s2726_s3 = sld [smem:[#allocation9_spill]] }
  0x13   : > { %s2727_s5 = sld [smem:[#allocation10_spill]]  ;;  %p2012_p5 = scmp.ne.s32.totalorder %s2291_s21, 0 }
  0x14   : > { %s2416_s25 = scalar_select %p728_p4, %s2291_s21, 1 }
  0x15   : > { %s2729_s2 = sld [smem:[#allocation7_spill]] (!%p2012_p5) }
  0x16   : > { %s2056_s26 = sshll.u32 %s2416_s25, 4  ;;  %s765_s27 = scalar_lea.vmem %s2705_s12, %s2416_s25 }
  0x17   : > { %s768_s30 = scalar_lea.vmem %s2706_s13, %s2416_s25  ;;  %s771_s15 = scalar_lea.vmem %s2707_s14, %s2416_s25 }
  0x18   : > { %s2426_s17 = scalar_lea.vmem %s2726_s3, %s2056_s26  ;;  %s2448_s3 = scalar_lea.vmem %s2702_s9, %s2056_s26 }
  0x19   : > { %s2431_s20 = scalar_lea.vmem %s2727_s5, %s2056_s26  ;;  %s757_s5 = scalar_lea.vmem %s2703_s10, %s2416_s25 }
  0x1a   : > { %2728 = sst [smem:[#allocation6_spill]] %s2431_s20  ;;  %s2059_s20 = sshll.u32 %s2416_s25, 6 }
  0x1b   : > { %s2458_s23 = scalar_lea.vmem %s2704_s11, %s2059_s20  ;;  %788 = sbr.rel (%p2012_p5) target bundleno = 55 (0x37), region = 84 }
  0x1c   : > { %s2730_s18 = sld [smem:[#allocation11_spill]] (!%p2012_p5) }
  0x20   : > { %v791_v0 = vld [vmem:[%s2694_s1] sm:$0xff]  ;;  %v792_v2 = vld [vmem:[%s2694_s1 + $0x8] sm:$0xff]  ;;  %vm801_vm0 = vcmask 261120  }
  0x21   : > { %v793_v1 = vmul.f32 0.5, %v791_v0  ;;  %v794_v3 = vmul.f32 0.5, %v792_v2  ;;  %v789_v6 = vld [vmem:[%s2729_s2] sm:$0xff]  ;;  %v790_v7 = vld [vmem:[%s2729_s2 + $0x8] sm:$0xff] }
  0x23   : > { %v795_v4 = vmul.f32 1.442695, %v793_v1  ;;  %v797_v5 = vmul.f32 1.442695, %v794_v3 }
  0x25   : > { %2218 = vpow2.f32 %v795_v4 }
  0x26   : > { %2220 = vpow2.f32 %v797_v5 }
  0x32   : > { %v2219_v8 = vpop.eup %2218 }
  0x33   : > { %v2221_v9 = vpop.eup %2220  ;;  %v799_v10 = vadd.f32 %v2219_v8, %v789_v6 }
  0x34   : > { %v800_v11 = vadd.f32 %v2221_v9, %v790_v7 }
  0x35   : > { %802 = vst.msk [vmem:[%s2730_s18] sm:$0xff] %vm801_vm0, %v799_v10  ;;  %804 = vst.msk [vmem:[#allocation2] sm:$0xff] %vm801_vm0, %v799_v10 }
  0x36   : > { %803 = vst.msk [vmem:[%s2730_s18 + $0x8] sm:$0xff] %vm801_vm0, %v800_v11  ;;  %805 = vst.msk [vmem:[#allocation2 + $0x8] sm:$0xff] %vm801_vm0, %v800_v11 }
  0x37 PF: > { %v2227_v12 = vld [vmem:[%s2426_s17 + $0x8] sm:$0xff]   ;;  %v2301_v13 = vmov 0.0   ;;  %v2228_v14 = vld [vmem:[%s2426_s17] sm:$0xff]   ;;  %vm2302_vm1 = vmmov 0   ;;  %vm865_vm2 = vcmask 261120   ;;  %s2731_s29 = scalar_lea.vmem %s2697_s4, %s2416_s25  ;;  %s2303_s24 = smov 96   ;;  %v910_v31 = vlaneseq }
  0x38   : > { %2094 = vmatprep.subr.bf16.mxu0 %v2301_v13  ;;  %2114 = vmatprep.subr.bf16.mxu1 %v2301_v13  ;;  %v2013_v18 = vld [vmem:[%s2731_s29] ss:$0 sm:$0xff]  ;;  %vm940_vm3 = vcmask 130048   ;;  %s2732_s26 = sld [smem:[#allocation8_spill]]  ;;  %vm1040_vm5 = vcmask 64512   ;;  %s2304_s20 = smov 64  }
  0x39   : > { %2095 = vmatpush3.bf16.msra.mxu0 %v2227_v12  ;;  %2098 = vmatprep.mubr.msk.bf16.mxu0 %vm2302_vm1, %v2301_v13  ;;  %v911_v32 = vshrl.u32 %v910_v31, 7  ;;  %v913_v33 = vand.u32 127, %v910_v31  ;;  %s2305_s17 = smov 80   ;;  %vm1070_vm6 = vcmask 1043456   ;;  %s2306_s22 = smov 112  }
  0x3a   : > { %2096 = vmatprep.subr.bf16.mxu0 %v2301_v13  ;;  %2116 = vmatprep.mubr.msk.bf16.mxu1 %vm2302_vm1, %v2301_v13  ;;  %s2307_s29 = smov 48   ;;  %s2308_s16 = smov 16  }
  0x3b   : > { %vm914_vm4 = vcmp.le.s32.totalorder %v913_v33, %v911_v32  ;;  %s2734_s19 = scalar_lea.vmem %s2699_s6, %s2416_s25  ;;  %p2049_p6 = scmp.ne.s32.totalorder %s2291_s21, 1 }
  0x3c   : > { %v2497_v15 = vld [vmem:[#allocation2] sm:$0xff]  ;;  %v2017_v35 = vsel %vm914_vm4, 1.0, %v2301_v13 }
  0x3d   : > { %v2499_v16 = vld [vmem:[#allocation2 + $0x8] sm:$0xff]  ;;  %2097 = vmatpush3.bf16.msra.mxu0 %v2228_v14 }
  0x3e   : > { %v846_v17 = vpack.c.bf16 %v2499_v16, %v2497_v15  ;;  %2102 = vmatprep.subr.bf16.mxu0 %v2301_v13  ;;  %v2018_v34 = vld [vmem:[%s2732_s26] ss:$0 sm:$0xff]  ;;  %v2019_v38 = vld [vmem:[%s2732_s26 + $0x1] ss:$0 sm:$0xff] }
  0x3f   : > { %v929_v36 = vmul.f32 %v2018_v34, %v2017_v35  ;;  %v930_v40 = vmul.f32 %v2019_v38, %v2017_v35 }
  0x40   : > { %2099 = vmatmul.mubr.msk.bf16.vlgmr.msra.gmra.mxu0 %vm865_vm2, %v846_v17 }
  0x41   : > { %2104 = vmatprep.mubr.msk.bf16.mxu0 %vm2302_vm1, %v2301_v13  ;;  %v931_v37 = vsub.f32 1.0, %v929_v36  ;;  %v932_v45 = vsub.f32 1.0, %v930_v40 }
  0x43   : > { %v2540_v39 = vmul.f32 -10000.0, %v931_v37  ;;  %v2544_v49 = vmul.f32 -10000.0, %v932_v45 }
 0x100   : > { %v903_v19 = vpop.f32.mrf.mxu0 }
 0x101   : > { %v904_v20 = vadd.f32 %v2013_v18, %v903_v19 }
 0x102   : > { %v2100_v21 = vpop.f32.mrf.mxu0 }
 0x103   : > { %v2515_v22 = vpack.c.bf16 %v904_v20, %v904_v20 }
 0x104   : > { %v906_v23 = vpop.f32.mrf.mxu0 }
 0x105   : > { %v907_v24 = vadd.f32 %v2013_v18, %v906_v23  ;;  %938 = vrot.lane.b32.xlu0 %v2515_v22, %s2303_s24 }
 0x106   : > { %v2101_v25 = vpop.f32.mrf.mxu0 }
 0x107   : > { %v2518_v26 = vpack.c.bf16 %v907_v24, %v907_v24 }
 0x109   : > { %988 = vrot.lane.b32.xlu0 %v2518_v26, %s2303_s24  ;;  %s2733_s24 = sld [smem:[#allocation6_spill]] }
 0x177   : > { %v939_v27 = vpop.permute.xlu0 %938 }
 0x178   : > { %v945_v28 = vsel %vm940_vm3, %v939_v27, 0 }
 0x179   : > { %2103 = vmatpush3.bf16.xpose.msra.mxu0 %v945_v28 }
 0x17a   : > { %2108 = vmatprep.subr.bf16.mxu0 %v2301_v13 }
 0x17b   : > { %v989_v29 = vpop.permute.xlu0 %988 }
 0x17c   : > { %v994_v30 = vsel %vm940_vm3, %v989_v29, 0 }
 0x180   : > { %2105 = vmatmul.mubr.msk.bf16.vlgmr.msra.gmra.mxu0 %vm940_vm3, %v2515_v22 }
 0x181   : > { %2109 = vmatpush3.bf16.xpose.msra.mxu0 %v994_v30  ;;  %2110 = vmatprep.mubr.msk.bf16.mxu0 %vm2302_vm1, %v2301_v13 }
 0x182   : > { %2120 = vmatprep.subr.bf16.mxu0 %v2301_v13 }
 0x188   : > { %2111 = vmatmul.mubr.msk.bf16.vlgmr.msra.gmra.mxu0 %vm940_vm3, %v2518_v26 }
 0x189   : > { %2122 = vmatprep.mubr.msk.bf16.mxu0 %vm2302_vm1, %v2301_v13 }
 0x240   : > { %v981_v41 = vpop.f32.mrf.mxu0 }
 0x241   : > { %v1036_v42 = vmul.f32 0.25, %v981_v41 }
 0x242   : > { %v2106_v43 = vpop.f32.mrf.mxu0 }
 0x243   : > { %v1038_v44 = vadd.f32 %v1036_v42, %v2540_v39 }
 0x244   : > { %v984_v46 = vpop.f32.mrf.mxu0 }
 0x245   : > { %v1041_v47 = vsel %vm1040_vm5, %v1038_v44, -inf }
 0x246   : > { %1042 = vmax.xlane.f32.xlu1 %v1041_v47  ;;  %v2107_v48 = vpop.f32.mrf.mxu0 }
 0x248   : > { %v1030_v50 = vpop.f32.mrf.mxu0 }
 0x249   : > { %v1037_v51 = vmul.f32 0.25, %v1030_v50 }
 0x24a   : > { %v2112_v52 = vpop.f32.mrf.mxu0 }
 0x24b   : > { %v1039_v53 = vadd.f32 %v1037_v51, %v2544_v49 }
 0x24c   : > { %v1033_v54 = vpop.f32.mrf.mxu0 }
 0x24d   : > { %v1044_v55 = vsel %vm1040_vm5, %v1039_v53, -inf }
 0x24e   : > { %1045 = vmax.xlane.f32.xlu1 %v1044_v55  ;;  %v2113_v56 = vpop.f32.mrf.mxu0 }
 0x25f   : > { %1065 = vrot.lane.b32.xlu1 %v2515_v22, %s2304_s20 }
 0x263   : > { %1114 = vrot.lane.b32.xlu1 %v2518_v26, %s2304_s20 }
 0x267   : > { %1164 = vrot.lane.b32.xlu1 %v2515_v22, %s2305_s17 }
 0x2cf   : > { %v1043_v57 = vpop.xlane.xlu1 %1042 }
 0x2d0   : > { %v1047_v58 = vsub.f32 %v1038_v44, %v1043_v57 }
 0x2d2   : > { %v1049_v59 = vmul.f32 1.442695, %v1047_v58 }
 0x2d4   : > { %2241 = vpow2.f32 %v1049_v59 }
 0x2d7   : > { %v1046_v60 = vpop.xlane.xlu1 %1045 }
 0x2d8   : > { %v1048_v61 = vsub.f32 %v1039_v53, %v1046_v60 }
 0x2da   : > { %v1051_v62 = vmul.f32 1.442695, %v1048_v61 }
 0x2db   : > { %v1066_v63 = vpop.permute.xlu1 %1065 }
 0x2dc   : > { %2243 = vpow2.f32 %v1051_v62  ;;  %v1072_v0 = vsel %vm1070_vm6, %v1066_v63, 0 }
 0x2dd   : > { %2115 = vmatpush3.bf16.msra.mxu1 %v1072_v0 }
 0x2de   : > { %2126 = vmatprep.subr.bf16.mxu1 %v2301_v13 }
 0x2df   : > { %v1115_v1 = vpop.permute.xlu1 %1114 }
 0x2e0   : > { %v1120_v2 = vsel %vm1070_vm6, %v1115_v1, 0 }
 0x2e1   : > { %v2242_v3 = vpop.eup %2241  ;;  %2121 = vmatpush3.bf16.msra.mxu0 %v1120_v2 }
 0x2e2   : > { %v1053_v4 = vsel %vm1040_vm5, %v2242_v3, 0.0  ;;  %2132 = vmatprep.subr.bf16.mxu0 %v2301_v13 }
 0x2e3   : > { %1054 = vadd.xlane.f32.xlu0 %v1053_v4  ;;  %v1165_v8 = vpop.permute.xlu1 %1164  ;;  %v2229_v4 = vld [vmem:[%s2733_s24 + $0x8] sm:$0xff]  }
 0x2e4   : > { %v1170_v14 = vsel %vm940_vm3, %v1165_v8, 0 }
 0x2e9   : > { %v2244_v5 = vpop.eup %2243 }
 0x2ea   : > { %v1056_v6 = vsel %vm1040_vm5, %v2244_v5, 0.0 }
 0x2eb   : > { %1057 = vadd.xlane.f32.xlu1 %v1056_v6 }
 0x2f9   : > { %1162 = vrot.lane.b32.xlu0 %v2515_v22, %s2306_s22 }
 0x2fc   : > { %1214 = vrot.lane.b32.xlu1 %v2518_v26, %s2305_s17  ;;  %s2735_s17 = scalar_lea.vmem %s2700_s7, %s2416_s25 }
 0x300   : > { %1212 = vrot.lane.b32.xlu1 %v2518_v26, %s2306_s22 }
 0x36c   : > { %v1055_v7 = vpop.xlane.xlu0 %1054 }
 0x36d   : > { %2245 = vrcp.f32 %v1055_v7 }
 0x370   : > { %v1163_v21 = vpop.permute.xlu0 %1162 }
 0x374   : > { %v1058_v9 = vpop.xlane.xlu1 %1057 }
 0x375   : > { %2247 = vrcp.f32 %v1058_v9 }
 0x378   : > { %v1215_v19 = vpop.permute.xlu1 %1214 }
 0x379   : > { %v1220_v23 = vsel %vm940_vm3, %v1215_v19, 0 }
 0x37a   : > { %v2246_v10 = vpop.eup %2245 }
 0x37b   : > { %v1061_v11 = vmul.f32 %v2246_v10, %v2242_v3 }
 0x37c   : > { %v1213_v24 = vpop.permute.xlu1 %1212 }
 0x37d   : > { %v1063_v12 = vpack.c.bf16 %v1061_v11, %v1061_v11 }
 0x37f   : > { %2117 = vmatmul.mubr.msk.bf16.vlgmr.msra.gmra.mxu1 %vm1040_vm5, %v1063_v12 }
 0x380   : > { %2127 = vmatpush3.bf16.xpose.msra.mxu1 %v1170_v14  ;;  %2128 = vmatprep.mubr.msk.bf16.mxu1 %vm2302_vm1, %v2301_v13 }
 0x381   : > { %2138 = vmatprep.subr.bf16.mxu1 %v2301_v13 }
 0x382   : > { %v2248_v17 = vpop.eup %2247 }
 0x383   : > { %v1062_v18 = vmul.f32 %v2248_v17, %v2244_v5  ;;  %v2230_v5 = vld [vmem:[%s2733_s24] sm:$0xff]   ;;  %s2736_s24 = scalar_lea.vmem %s2701_s8, %s2416_s25 }
 0x385   : > { %v1064_v20 = vpack.c.bf16 %v1062_v18, %v1062_v18 }
 0x387   : > { %2123 = vmatmul.mubr.msk.bf16.vlgmr.msra.gmra.mxu0 %vm1040_vm5, %v1064_v20  ;;  %2129 = vmatmul.mubr.msk.bf16.vlgmr.msra.gmra.mxu1 %vm940_vm3, %v1163_v21 }
 0x388   : > { %2133 = vmatpush3.bf16.xpose.msra.mxu0 %v1220_v23  ;;  %2134 = vmatprep.mubr.msk.bf16.mxu0 %vm2302_vm1, %v2301_v13 }
 0x389   : > { %2144 = vmatprep.subr.bf16.mxu0 %v2301_v13  ;;  %2140 = vmatprep.mubr.msk.bf16.mxu1 %vm2302_vm1, %v2301_v13 }
 0x38f   : > { %2135 = vmatmul.mubr.msk.bf16.vlgmr.msra.gmra.mxu0 %vm940_vm3, %v1213_v24 }
 0x390   : > { %2146 = vmatprep.mubr.msk.bf16.mxu0 %vm2302_vm1, %v2301_v13 }
 0x43f   : > { %v2576_v25 = vpop.f32.mrf.mxu1 }
 0x441   : > { %v2118_v27 = vpop.f32.mrf.mxu1 }
 0x442   : > { %v2028_v27 = vld [vmem:[%s2734_s19] ss:$0 sm:$0xff] }
 0x443   : > { %v1111_v28 = vpop.f32.mrf.mxu1 }
 0x445   : > { %v2119_v29 = vpop.f32.mrf.mxu1 }
 0x447   : > { %v2578_v30 = vpop.f32.mrf.mxu0  ;;  %v1206_v31 = vpop.f32.mrf.mxu1 }
 0x448   : > { %v1262_v32 = vmul.f32 0.25, %v1206_v31 }
 0x449   : > { %v2124_v33 = vpop.f32.mrf.mxu0  ;;  %v2130_v34 = vpop.f32.mrf.mxu1 }
 0x44a   : > { %v1264_v35 = vadd.f32 %v1262_v32, %v2540_v39 }
 0x44b   : > { %v1159_v36 = vpop.f32.mrf.mxu0  ;;  %v1209_v37 = vpop.f32.mrf.mxu1 }
 0x44c   : > { %v1266_v38 = vsel %vm1040_vm5, %v1264_v35, -inf }
 0x44d   : > { %1267 = vmax.xlane.f32.xlu1 %v1266_v38  ;;  %v2125_v40 = vpop.f32.mrf.mxu0  ;;  %v2131_v41 = vpop.f32.mrf.mxu1 }
 0x44f   : > { %v1256_v42 = vpop.f32.mrf.mxu0 }
 0x450   : > { %v1263_v43 = vmul.f32 0.25, %v1256_v42 }
 0x451   : > { %v2136_v44 = vpop.f32.mrf.mxu0 }
 0x452   : > { %v1265_v45 = vadd.f32 %v1263_v43, %v2544_v49 }
 0x453   : > { %v1259_v46 = vpop.f32.mrf.mxu0 }
 0x454   : > { %v1269_v47 = vsel %vm1040_vm5, %v1265_v45, -inf }
 0x455   : > { %1270 = vmax.xlane.f32.xlu0 %v1269_v47  ;;  %v2137_v48 = vpop.f32.mrf.mxu0  ;;  %v2232_v47 = vld [vmem:[%s2448_s3] sm:$0xff]  }
 0x456   : > { %v2233_v48 = vld [vmem:[%s2458_s23 + $0x38] sm:$0xff]  }
 0x46b   : > { %1338 = vrot.lane.b32.xlu0 %v2518_v26, %s2307_s29 }
 0x4d6   : > { %v1268_v39 = vpop.xlane.xlu1 %1267 }
 0x4d7   : > { %v1272_v50 = vsub.f32 %v1264_v35, %v1268_v39 }
 0x4d9   : > { %v1274_v51 = vmul.f32 1.442695, %v1272_v50 }
 0x4db   : > { %2249 = vpow2.f32 %v1274_v51 }
 0x4de   : > { %v1271_v52 = vpop.xlane.xlu0 %1270 }
 0x4df   : > { %v1273_v53 = vsub.f32 %v1265_v45, %v1271_v52 }
 0x4e1   : > { %v1276_v54 = vmul.f32 1.442695, %v1273_v53 }
 0x4e2   : > { %v1339_v55 = vpop.permute.xlu0 %1338 }
 0x4e3   : > { %2251 = vpow2.f32 %v1276_v54  ;;  %v1344_v56 = vsel %vm1070_vm6, %v1339_v55, 0 }
 0x4e4   : > { %2145 = vmatpush3.bf16.msra.mxu0 %v1344_v56 }
 0x4e5   : > { %2158 = vmatprep.subr.bf16.mxu0 %v2301_v13 }
 0x4e8   : > { %v2250_v49 = vpop.eup %2249 }
 0x4e9   : > { %v1278_v57 = vsel %vm1040_vm5, %v2250_v49, 0.0 }
 0x4ea   : > { %1279 = vadd.xlane.f32.xlu1 %v1278_v57 }
 0x4f0   : > { %v2252_v58 = vpop.eup %2251 }
 0x4f1   : > { %v1281_v26 = vsel %vm1040_vm5, %v2252_v58, 0.0 }
 0x4f2   : > { %1282 = vadd.xlane.f32.xlu1 %v1281_v26 }
 0x503   : > { %1290 = vrot.lane.b32.xlu1 %v2515_v22, %s2307_s29 }
 0x573   : > { %v1280_v59 = vpop.xlane.xlu1 %1279 }
 0x574   : > { %2253 = vrcp.f32 %v1280_v59 }
 0x57b   : > { %v1283_v60 = vpop.xlane.xlu1 %1282 }
 0x57c   : > { %2255 = vrcp.f32 %v1283_v60 }
 0x57f   : > { %v1291_v61 = vpop.permute.xlu1 %1290 }
 0x580   : > { %v1296_v62 = vsel %vm1070_vm6, %v1291_v61, 0 }
 0x581   : > { %v2254_v63 = vpop.eup %2253  ;;  %2139 = vmatpush3.bf16.msra.mxu1 %v1296_v62 }
 0x582   : > { %v1286_v0 = vmul.f32 %v2254_v63, %v2250_v49  ;;  %2150 = vmatprep.subr.bf16.mxu1 %v2301_v13 }
 0x584   : > { %v1288_v1 = vpack.c.bf16 %v1286_v0, %v1286_v0 }
 0x586   : > { %2141 = vmatmul.mubr.msk.bf16.vlgmr.msra.gmra.mxu1 %vm1040_vm5, %v1288_v1  ;;  %v2032_v1 = vld [vmem:[%s2735_s17] ss:$0 sm:$0xff]  ;;  %s2737_s17 = sld [smem:[#allocation12_spill]] (!%p2049_p6) }
 0x587   : > { %2154 = vmatprep.mubr.msk.bf16.mxu1 %vm2302_vm1, %v2301_v13  ;;  %2151 = vmatpush3.bf16.msra.mxu1 %v2229_v4  ;;  %v2033_v4 = vld [vmem:[%s2736_s24] ss:$0 sm:$0xff] }
 0x588   : > { %2152 = vmatprep.subr.bf16.mxu1 %v2301_v13 }
 0x589   : > { %v2256_v22 = vpop.eup %2255 }
 0x58a   : > { %v1287_v2 = vmul.f32 %v2256_v22, %v2252_v58 }
 0x58b   : > { %2153 = vmatpush3.bf16.msra.mxu1 %v2230_v5 }
 0x58c   : > { %v1289_v3 = vpack.c.bf16 %v1287_v2, %v1287_v2  ;;  %2166 = vmatprep.subr.bf16.mxu1 %v2301_v13 }
 0x58e   : > { %2147 = vmatmul.mubr.msk.bf16.vlgmr.msra.gmra.mxu0 %vm1040_vm5, %v1289_v3 }
 0x58f   : > { %2162 = vmatprep.mubr.msk.bf16.mxu0 %vm2302_vm1, %v2301_v13 }
 0x646   : > { %v1332_v6 = vpop.f32.mrf.mxu1 }
 0x648   : > { %v2142_v7 = vpop.f32.mrf.mxu1 }
 0x64a   : > { %v1335_v8 = vpop.f32.mrf.mxu1 }
 0x64c   : > { %v2143_v9 = vpop.f32.mrf.mxu1 }
 0x64d   : > { %v2234_v9 = vld [vmem:[%s2458_s23 + $0x30] sm:$0xff]  }
 0x64e   : > { %v1380_v10 = vpop.f32.mrf.mxu0 }
 0x64f   : > { %v2222_v11 = vpack.i.bf16 %v1380_v10, %v1332_v6  ;;  %v2235_v10 = vld [vmem:[%s2458_s23 + $0x28] sm:$0xff]  }
 0x650   : > { %v2148_v12 = vpop.f32.mrf.mxu0 }
 0x651   : > { %2223 = vrot.lane.b32.xlu1 %v2222_v11, %s2308_s16  ;;  %v2236_v11 = vld [vmem:[%s2458_s23 + $0x20] sm:$0xff]   ;;  %v2237_v12 = vld [vmem:[%s2458_s23 + $0x18] sm:$0xff]  }
 0x652   : > { %v1383_v14 = vpop.f32.mrf.mxu0 }
 0x653   : > { %v2238_v14 = vld [vmem:[%s2458_s23 + $0x10] sm:$0xff]  }
 0x654   : > { %v2149_v17 = vpop.f32.mrf.mxu0 }
 0x655   : > { %v2239_v17 = vld [vmem:[%s2458_s23 + $0x8] sm:$0xff]  }
 0x6c3   : > { %v2224_v18 = vpop.permute.xlu1 %2223 }
 0x6c4   : > { %v2226_v19 = vunpack.i.h.bf16 %v2224_v18  ;;  %v2225_v20 = vunpack.i.l.bf16 %v2224_v18  ;;  %v2240_v18 = vld [vmem:[%s2458_s23] sm:$0xff]  }
 0x6c6   : > { %v1395_v21 = vsel %vm940_vm3, %v2578_v30, %v2226_v19  ;;  %v1394_v23 = vsel %vm940_vm3, %v2576_v25, %v2225_v20  ;;  %v2034_v19 = vld [vmem:[%s757_s5] ss:$0 sm:$0xff] }
 0x6c7   : > { %v1396_v24 = vpack.c.bf16 %v1395_v21, %v1394_v23 }
 0x6c9   : > { %2155 = vmatmul.mubr.msk.bf16.vlgmr.msra.gmra.mxu1 %vm865_vm2, %v1396_v24 }
 0x6ca   : > { %2182 = vmatprep.mubr.msk.bf16.mxu1 %vm2302_vm1, %v2301_v13  ;;  %2167 = vmatpush3.bf16.msra.mxu1 %v2233_v48 }
 0x6cb   : > { %2168 = vmatprep.subr.bf16.mxu1 %v2301_v13 }
 0x6ce   : > { %2169 = vmatpush3.bf16.msra.mxu1 %v2234_v9 }
 0x6cf   : > { %2170 = vmatprep.subr.bf16.mxu1 %v2301_v13 }
 0x6d2   : > { %2171 = vmatpush3.bf16.msra.mxu1 %v2235_v10  ;;  %v2048_v10 = vld [vmem:[%s771_s15] ss:$0 sm:$0xff] }
 0x6d3   : > { %2172 = vmatprep.subr.bf16.mxu1 %v2301_v13 }
 0x6d6   : > { %2173 = vmatpush3.bf16.msra.mxu1 %v2236_v11 }
 0x6d7   : > { %2174 = vmatprep.subr.bf16.mxu1 %v2301_v13 }
 0x6da   : > { %2175 = vmatpush3.bf16.msra.mxu1 %v2237_v12 }
 0x6db   : > { %2176 = vmatprep.subr.bf16.mxu1 %v2301_v13 }
 0x6de   : > { %2177 = vmatpush3.bf16.msra.mxu1 %v2238_v14 }
 0x6df   : > { %2178 = vmatprep.subr.bf16.mxu1 %v2301_v13 }
 0x6e2   : > { %2179 = vmatpush3.bf16.msra.mxu1 %v2239_v17 }
 0x6e3   : > { %2180 = vmatprep.subr.bf16.mxu1 %v2301_v13 }
 0x6e6   : > { %2181 = vmatpush3.bf16.msra.mxu1 %v2240_v18 }
 0x789   : > { %v1452_v28 = vpop.f32.mrf.mxu1 }
 0x78a   : > { %v1453_v29 = vadd.f32 %v2028_v27, %v1452_v28 }
 0x78b   : > { %v2156_v31 = vpop.f32.mrf.mxu1 }
 0x78c   : > { %v1459_v32 = vadd.f32 %v1453_v29, %v2497_v15 }
 0x78d   : > { %v1455_v30 = vpop.f32.mrf.mxu1 }
 0x78e   : > { %v1456_v33 = vadd.f32 %v2028_v27, %v1455_v30  ;;  %v1461_v25 = vsel %vm865_vm2, %v1459_v32, 0.0 }
 0x78f   : > { %1462 = vadd.xlane.f32.xlu1 %v1461_v25  ;;  %v2157_v34 = vpop.f32.mrf.mxu1 }
 0x790   : > { %v1460_v35 = vadd.f32 %v1456_v33, %v2499_v16  ;;  %v2231_v16 = vld [vmem:[%s2448_s3 + $0x8] sm:$0xff]  }
 0x791   : > { %2159 = vmatpush3.bf16.msra.mxu0 %v2231_v16 }
 0x792   : > { %v1464_v36 = vsel %vm865_vm2, %v1460_v35, 0.0  ;;  %2160 = vmatprep.subr.bf16.mxu0 %v2301_v13 }
 0x793   : > { %1465 = vadd.xlane.f32.xlu0 %v1464_v36 }
 0x795   : > { %2161 = vmatpush3.bf16.msra.mxu0 %v2232_v47 }
 0x818   : > { %v1463_v37 = vpop.xlane.xlu1 %1462 }
 0x819   : > { %v1468_v38 = vmul.f32 0.03125, %v1463_v37 }
 0x81b   : > { %v1470_v40 = vsub.f32 %v1459_v32, %v1468_v38  ;;  %v2038_v38 = vld [vmem:[%s765_s27] ss:$0 sm:$0xff] }
 0x81c   : > { %v1466_v41 = vpop.xlane.xlu0 %1465 }
 0x81d   : > { %v1469_v42 = vmul.f32 0.03125, %v1466_v41  ;;  %v1472_v15 = vmul.f32 %v1470_v40, %v1470_v40 }
 0x81f   : > { %v1471_v43 = vsub.f32 %v1460_v35, %v1469_v42  ;;  %v1474_v44 = vsel %vm865_vm2, %v1472_v15, 0.0 }
 0x820   : > { %1475 = vadd.xlane.f32.xlu0 %v1474_v44 }
 0x821   : > { %v1473_v45 = vmul.f32 %v1471_v43, %v1471_v43 }
 0x823   : > { %v1477_v46 = vsel %vm865_vm2, %v1473_v45, 0.0 }
 0x824   : > { %1478 = vadd.xlane.f32.xlu1 %v1477_v46 }
 0x8a9   : > { %v1476_v39 = vpop.xlane.xlu0 %1475 }
 0x8aa   : > { %v1480_v50 = vmul.f32 0.03125, %v1476_v39 }
 0x8ac   : > { %v1482_v51 = vadd.f32 1e-12, %v1480_v50 }
 0x8ad   : > { %v1479_v52 = vpop.xlane.xlu1 %1478 }
 0x8ae   : > { %2257 = vrsqrt.f32 %v1482_v51  ;;  %v1481_v53 = vmul.f32 0.03125, %v1479_v52  ;;  %vm1486_vm7 = vcmp.eq.f32.partialorder %v1482_v51, inf  ;;  %v1489_v49 = vand.u32 2147483648, %v1482_v51 }
 0x8af   : > { %vm1488_vm8 = vcmp.eq.f32.partialorder %v1482_v51, 0.0 }
 0x8b0   : > { %v1483_v54 = vadd.f32 1e-12, %v1481_v53 }
 0x8b2   : > { %2259 = vrsqrt.f32 %v1483_v54  ;;  %vm1493_vm9 = vcmp.eq.f32.partialorder %v1483_v54, inf  ;;  %v1496_v60 = vand.u32 2147483648, %v1483_v54  ;;  %vm1495_vm10 = vcmp.eq.f32.partialorder %v1483_v54, 0.0 }
 0x8bb   : > { %v2258_v55 = vpop.eup %2257 }
 0x8bc   : > { %v1485_v56 = vmul.f32 %v2258_v55, %v1482_v51 }
 0x8be   : > { %v1487_v57 = vsel %vm1486_vm7, %v1482_v51, %v1485_v56 }
 0x8bf   : > { %v1490_v58 = vsel %vm1488_vm8, %v1489_v49, %v1487_v57  ;;  %v2260_v26 = vpop.eup %2259 }
 0x8c0   : > { %2261 = vrcp.f32 %v1490_v58  ;;  %v1492_v59 = vmul.f32 %v2260_v26, %v1483_v54 }
 0x8c2   : > { %v1494_v61 = vsel %vm1493_vm9, %v1483_v54, %v1492_v59 }
 0x8c3   : > { %v1497_v62 = vsel %vm1495_vm10, %v1496_v60, %v1494_v61 }
 0x8c4   : > { %2263 = vrcp.f32 %v1497_v62 }
 0x8cd   : > { %v2262_v63 = vpop.eup %2261 }
 0x8ce   : > { %v1499_v0 = vmul.f32 %v2262_v63, %v1470_v40 }
 0x8d0   : > { %v1508_v3 = vmul.f32 %v2032_v1, %v1499_v0 }
 0x8d1   : > { %v2264_v22 = vpop.eup %2263 }
 0x8d2   : > { %v1501_v2 = vmul.f32 %v2264_v22, %v1471_v43  ;;  %v1516_v6 = vadd.f32 %v2033_v4, %v1508_v3 }
 0x8d4   : > { %v1509_v5 = vmul.f32 %v2032_v1, %v1501_v2 }
 0x8d6   : > { %v1517_v7 = vadd.f32 %v2033_v4, %v1509_v5 }
 0x8d8   : > { %v1518_v8 = vpack.c.bf16 %v1517_v7, %v1516_v6 }
 0x8da   : > { %2163 = vmatmul.mubr.msk.bf16.vlgmr.msra.gmra.mxu0 %vm865_vm2, %v1518_v8  ;;  %v2047_v8 = vld [vmem:[%s768_s30] ss:$0 sm:$0xff] }
 0x99a   : > { %v1574_v20 = vpop.f32.mrf.mxu0 }
 0x99b   : > { %v1575_v21 = vadd.f32 %v2034_v19, %v1574_v20 }
 0x99c   : > { %v2164_v23 = vpop.f32.mrf.mxu0 }
 0x99d   : > { %v1584_v24 = vmul.f32 0.70710677, %v1575_v21  ;;  %v1581_v33 = vmul.f32 0.5, %v1575_v21 }
 0x99e   : > { %v1577_v27 = vpop.f32.mrf.mxu0 }
 0x99f   : > { %2265 = verf.f32 %v1584_v24  ;;  %v1578_v28 = vadd.f32 %v2034_v19, %v1577_v27 }
 0x9a0   : > { %v2165_v29 = vpop.f32.mrf.mxu0 }
 0x9a1   : > { %v1585_v31 = vmul.f32 0.70710677, %v1578_v28  ;;  %v1582_v25 = vmul.f32 0.5, %v1578_v28 }
 0x9a3   : > { %2267 = verf.f32 %v1585_v31 }
 0x9ac   : > { %v2266_v32 = vpop.eup %2265 }
 0x9ad   : > { %v1588_v13 = vadd.f32 1.0, %v2266_v32 }
 0x9af   : > { %v1590_v35 = vmul.f32 %v1588_v13, %v1581_v33 }
 0x9b0   : > { %v2268_v30 = vpop.eup %2267 }
 0x9b1   : > { %v1589_v34 = vadd.f32 1.0, %v2268_v30 }
 0x9b3   : > { %v1591_v36 = vmul.f32 %v1589_v34, %v1582_v25 }
 0x9b5   : > { %v1592_v37 = vpack.c.bf16 %v1591_v36, %v1590_v35 }
 0x9b7   : > { %2183 = vmatmul.mubr.bf16.vlgmr.msra.gmra.mxu1 %v1592_v37 }
 0xa77   : > { %v1681_v40 = vpop.f32.mrf.mxu1 }
 0xa78   : > { %v1682_v41 = vadd.f32 %v2038_v38, %v1681_v40 }
 0xa79   : > { %v2184_v42 = vpop.f32.mrf.mxu1 }
 0xa7a   : > { %v1688_v15 = vadd.f32 %v1682_v41, %v1516_v6 }
 0xa7b   : > { %v1684_v43 = vpop.f32.mrf.mxu1 }
 0xa7c   : > { %v1685_v44 = vadd.f32 %v2038_v38, %v1684_v43  ;;  %v1690_v45 = vsel %vm865_vm2, %v1688_v15, 0.0 }
 0xa7d   : > { %1691 = vadd.xlane.f32.xlu0 %v1690_v45  ;;  %v2185_v46 = vpop.f32.mrf.mxu1 }
 0xa7e   : > { %v1689_v16 = vadd.f32 %v1685_v44, %v1517_v7 }
 0xa80   : > { %v1693_v47 = vsel %vm865_vm2, %v1689_v16, 0.0 }
 0xa81   : > { %1694 = vadd.xlane.f32.xlu1 %v1693_v47 }
 0xb06   : > { %v1692_v48 = vpop.xlane.xlu0 %1691 }
 0xb07   : > { %v1696_v39 = vmul.f32 0.03125, %v1692_v48 }
 0xb09   : > { %v1698_v50 = vsub.f32 %v1688_v15, %v1696_v39 }
 0xb0a   : > { %v1695_v51 = vpop.xlane.xlu1 %1694 }
 0xb0b   : > { %v1697_v52 = vmul.f32 0.03125, %v1695_v51  ;;  %v1700_v53 = vmul.f32 %v1698_v50, %v1698_v50 }
 0xb0d   : > { %v1699_v54 = vsub.f32 %v1689_v16, %v1697_v52  ;;  %v1702_v55 = vsel %vm865_vm2, %v1700_v53, 0.0 }
 0xb0e   : > { %1703 = vadd.xlane.f32.xlu0 %v1702_v55 }
 0xb0f   : > { %v1701_v56 = vmul.f32 %v1699_v54, %v1699_v54 }
 0xb11   : > { %v1705_v49 = vsel %vm865_vm2, %v1701_v56, 0.0 }
 0xb12   : > { %1706 = vadd.xlane.f32.xlu1 %v1705_v49 }
 0xb97   : > { %v1704_v57 = vpop.xlane.xlu0 %1703 }
 0xb98   : > { %v1708_v58 = vmul.f32 0.03125, %v1704_v57 }
 0xb9a   : > { %v1710_v26 = vadd.f32 1e-12, %v1708_v58 }
 0xb9b   : > { %v1707_v59 = vpop.xlane.xlu1 %1706 }
 0xb9c   : > { %2269 = vrsqrt.f32 %v1710_v26  ;;  %v1709_v60 = vmul.f32 0.03125, %v1707_v59  ;;  %vm1714_vm11 = vcmp.eq.f32.partialorder %v1710_v26, inf  ;;  %v1717_v0 = vand.u32 2147483648, %v1710_v26 }
 0xb9d   : > { %vm1716_vm12 = vcmp.eq.f32.partialorder %v1710_v26, 0.0 }
 0xb9e   : > { %v1711_v61 = vadd.f32 1e-12, %v1709_v60 }
 0xba0   : > { %2271 = vrsqrt.f32 %v1711_v61  ;;  %vm1721_vm13 = vcmp.eq.f32.partialorder %v1711_v61, inf  ;;  %v1724_v4 = vand.u32 2147483648, %v1711_v61  ;;  %vm1723_vm14 = vcmp.eq.f32.partialorder %v1711_v61, 0.0 }
 0xba9   : > { %v2270_v62 = vpop.eup %2269 }
 0xbaa   : > { %v1713_v63 = vmul.f32 %v2270_v62, %v1710_v26 }
 0xbac   : > { %v1715_v1 = vsel %vm1714_vm11, %v1710_v26, %v1713_v63 }
 0xbad   : > { %v1718_v22 = vsel %vm1716_vm12, %v1717_v0, %v1715_v1  ;;  %v2272_v2 = vpop.eup %2271 }
 0xbae   : > { %2273 = vrcp.f32 %v1718_v22  ;;  %v1720_v3 = vmul.f32 %v2272_v2, %v1711_v61 }
 0xbb0   : > { %v1722_v5 = vsel %vm1721_vm13, %v1711_v61, %v1720_v3 }
 0xbb1   : > { %v1725_v6 = vsel %vm1723_vm14, %v1724_v4, %v1722_v5 }
 0xbb2   : > { %2275 = vrcp.f32 %v1725_v6 }
 0xbbb   : > { %v2274_v7 = vpop.eup %2273 }
 0xbbc   : > { %v1727_v9 = vmul.f32 %v2274_v7, %v1698_v50 }
 0xbbe   : > { %v1736_v11 = vmul.f32 %v2047_v8, %v1727_v9 }
 0xbbf   : > { %v2276_v12 = vpop.eup %2275 }
 0xbc0   : > { %v1744_v14 = vadd.f32 %v2048_v10, %v1736_v11  ;;  %v1729_v17 = vmul.f32 %v2276_v12, %v1699_v54 }
 0xbc2   : > { %1746 = vst.msk [vmem:[#allocation2] sm:$0xff] %vm865_vm2, %v1744_v14  ;;  %v1737_v18 = vmul.f32 %v2047_v8, %v1729_v17  ;;  %1751 = sbr.rel (%p2049_p6) target bundleno = 3016 (0xbc8), region = 88 }
 0xbc4   : > { %v1745_v19 = vadd.f32 %v2048_v10, %v1737_v18 }
 0xbc6   : > { %1747 = vst.msk [vmem:[#allocation2 + $0x8] sm:$0xff] %vm865_vm2, %v1745_v19 }
 0xbc7   : > { %1752 = vst.msk [vmem:[%s2737_s17] sm:$0xff] %vm865_vm2, %v1744_v14  ;;  %1753 = vst.msk [vmem:[%s2737_s17 + $0x8] sm:$0xff] %vm865_vm2, %v1745_v19 }
 0xbc8 PF: > { %s2738_s22 = sld [smem:[#allocation4_spill]] }
 0xbc9   : > { %s2739_s21 = sld [smem:[#allocation3_spill]] }
 0xbce   : > { %s27_s23 = sadd.s32 1, %s2738_s22   ;;  %s2740_s22 = sld [smem:[#allocation5_spill]] }
 0xbcf   : > { %p24_p7 = scmp.ge.s32.totalorder %s27_s23, 4  }
 0xbd1   :  { %26 = sbr.rel (!%p24_p7) target bundleno = 7 (0x7), region = 172 }

// kernel: contrastvae_vd_forward.5
= control target key start
LH: loop header
LB: loop body
LE: loop exit
PB: predicated region body
PF: predicated region fallthrough
CT: control target
= control target key end

     0   :  { %s2229_s29 = smov 0   ;;  %s2231_s30 = smov 0   ;;  %s2512_s0 = inlined_call_operand.vmem [shape: f32[2,8,32], index: 0, kind: input, shape index: {}]   ;;  %s2513_s1 = inlined_call_operand.vmem [shape: f32[2,1,8], index: 1, kind: input, shape index: {}]   ;;  %s2514_s2 = inlined_call_operand.vmem [shape: bf16[2,32,96], index: 2, kind: input, shape index: {}]   ;;  %s2515_s3 = inlined_call_operand.vmem [shape: f32[2,1,96], index: 3, kind: input, shape index: {}]   ;;  %s2516_s4 = inlined_call_operand.vmem [shape: bf16[2,32,32], index: 4, kind: input, shape index: {}]   ;;  %s2517_s5 = inlined_call_operand.vmem [shape: f32[2,1,32], index: 5, kind: input, shape index: {}]   ;;  %s2518_s6 = inlined_call_operand.vmem [shape: f32[2,1,32], index: 6, kind: input, shape index: {}]   ;;  %s2519_s7 = inlined_call_operand.vmem [shape: f32[2,1,32], index: 7, kind: input, shape index: {}]   ;;  %s2520_s8 = inlined_call_operand.vmem [shape: bf16[2,32,128], index: 8, kind: input, shape index: {}]   ;;  %s2521_s9 = inlined_call_operand.vmem [shape: f32[2,1,128], index: 9, kind: input, shape index: {}]   ;;  %s2522_s10 = inlined_call_operand.vmem [shape: bf16[2,128,32], index: 10, kind: input, shape index: {}]   ;;  %s2523_s11 = inlined_call_operand.vmem [shape: f32[2,1,32], index: 11, kind: input, shape index: {}]   ;;  %s2524_s12 = inlined_call_operand.vmem [shape: f32[2,1,32], index: 12, kind: input, shape index: {}]   ;;  %s2525_s13 = inlined_call_operand.vmem [shape: f32[2,1,32], index: 13, kind: input, shape index: {}]   ;;  %s2526_s14 = inlined_call_operand.vmem [shape: f32[2,8,32], index: 14, kind: output, shape index: {}]  }
   0x1   :  { %2532 = sst [smem:[#allocation6_spill]] %s2512_s0  ;;  %s2233_s15 = smov 0  }
   0x2   :  { %2533 = sst [smem:[#allocation7_spill]] %s2513_s1 }
   0x3   :  { %2534 = sst [smem:[#allocation8_spill]] %s2514_s2 }
   0x4   :  { %2535 = sst [smem:[#allocation9_spill]] %s2516_s4 }
   0x5   :  { %2536 = sst [smem:[#allocation10_spill]] %s2526_s14 }
   0x6 LB: > { %2537 = sst [smem:[#allocation3_spill]] %s2140_s30  ;;  %s33_s16 = sadd.s32 1, %s2140_s30  ;;  %s2144_s15 = sphi %s2233_s15, %s24_s15   ;;  %s2140_s30 = sphi %s2231_s30, %s2551_s30   ;;  %s2136_s29 = sphi %s2229_s29, %s2550_s29  }
   0x7   : > { %2538 = sst [smem:[#allocation4_spill]] %s2144_s15  ;;  %p1854_p0 = scmp.ge.s32.totalorder %s2144_s15, 1 }
   0x8   : > { %p34_p1 = scmp.ge.s32.totalorder %s33_s16, 2  ;;  %p539_p2 = scmp.lt.s32.totalorder %s2144_s15, 3 }
   0xa   : > { %s2553_s16 = smov (%p34_p1, %s33_s16), 0  ;;  %p540_p3 = pnand %p1854_p0, %p539_p2 }
   0xb   : > { %2539 = sst [smem:[#allocation5_spill]] %s2553_s16  ;;  %p644_p4 = scmp.lt.s32.totalorder (!%p540_p3), %s2136_s29, 1 }
   0xc   : > { %543 = sbr.rel (%p540_p3) target bundleno = 2992 (0xbb0), region = 76  ;;  %s2540_s2 = sld [smem:[#allocation8_spill]] (!%p540_p3) }
   0xd   : > { %s2541_s4 = sld [smem:[#allocation9_spill]] (!%p540_p3)  ;;  %p1863_p5 = scmp.ne.s32.totalorder (!%p540_p3), %s2136_s29, 0 }
  0x11   : > { %s2251_s17 = scalar_select %p644_p4, %s2136_s29, 1 }
  0x12   : > { %s2542_s16 = sld [smem:[#allocation6_spill]] (!%p1863_p5) }
  0x13   : > { %s1905_s18 = sshll.u32 %s2251_s17, 4  ;;  %s681_s0 = scalar_lea.vmem %s2523_s11, %s2251_s17 }
  0x14   : > { %s648_s24 = scalar_lea.vmem %s2540_s2, %s1905_s18  ;;  %s2264_s27 = scalar_lea.vmem %s2541_s4, %s1905_s18 }
  0x15   : > { %s2281_s23 = scalar_lea.vmem %s2520_s8, %s1905_s18  ;;  %s673_s2 = scalar_lea.vmem %s2521_s9, %s2251_s17 }
  0x16   : > { %s1908_s4 = sshll.u32 %s2251_s17, 6  ;;  %s684_s21 = scalar_lea.vmem %s2524_s12, %s2251_s17 }
  0x17   : > { %s2291_s30 = scalar_lea.vmem %s2522_s10, %s1908_s4  ;;  %s687_s1 = scalar_lea.vmem %s2525_s13, %s2251_s17 }
  0x18   : > { %698 = sbr.rel (%p1863_p5) target bundleno = 31 (0x1f), region = 80 }
  0x1d   : > { %v699_v0 = vld [vmem:[%s2542_s16] sm:$0xff]  ;;  %vm701_vm0 = vcmask 261120   ;;  %v700_v1 = vld [vmem:[%s2542_s16 + $0x8] sm:$0xff] }
  0x1e   : > { %702 = vst.msk [vmem:[#allocation2] sm:$0xff] %vm701_vm0, %v699_v0  ;;  %703 = vst.msk [vmem:[#allocation2 + $0x8] sm:$0xff] %vm701_vm0, %v700_v1 }
  0x1f PF: > { %v2072_v2 = vld [vmem:[%s648_s24 + $0x8] sm:$0xff]   ;;  %v2146_v3 = vmov 0.0   ;;  %v2073_v4 = vld [vmem:[%s648_s24] sm:$0xff]   ;;  %vm2147_vm1 = vmmov 0   ;;  %vm763_vm2 = vcmask 261120   ;;  %s2543_s14 = scalar_lea.vmem %s2515_s3, %s2251_s17  ;;  %s2148_s15 = smov 96   ;;  %v808_v21 = vlaneseq }
  0x20   : > { %1943 = vmatprep.subr.bf16.mxu0 %v2146_v3  ;;  %1963 = vmatprep.subr.bf16.mxu1 %v2146_v3  ;;  %v1864_v8 = vld [vmem:[%s2543_s14] ss:$0 sm:$0xff]  ;;  %vm838_vm3 = vcmask 130048   ;;  %s2544_s22 = sld [smem:[#allocation7_spill]]  ;;  %vm938_vm5 = vcmask 64512   ;;  %s2149_s4 = smov 64  }
  0x21   : > { %1944 = vmatpush3.bf16.msra.mxu0 %v2072_v2  ;;  %1947 = vmatprep.mubr.msk.bf16.mxu0 %vm2147_vm1, %v2146_v3  ;;  %v809_v22 = vshrl.u32 %v808_v21, 7  ;;  %v811_v23 = vand.u32 127, %v808_v21  ;;  %s2150_s28 = smov 80   ;;  %vm968_vm6 = vcmask 1043456   ;;  %s2151_s24 = smov 112  }
  0x22   : > { %1945 = vmatprep.subr.bf16.mxu0 %v2146_v3  ;;  %1965 = vmatprep.mubr.msk.bf16.mxu1 %vm2147_vm1, %v2146_v3  ;;  %s2152_s20 = smov 48   ;;  %s2153_s14 = smov 16  }
  0x23   : > { %vm812_vm4 = vcmp.le.s32.totalorder %v811_v23, %v809_v22  ;;  %s2545_s19 = scalar_lea.vmem %s2517_s5, %s2251_s17  ;;  %s2546_s25 = scalar_lea.vmem %s2518_s6, %s2251_s17 }
  0x24   : > { %v1868_v25 = vsel %vm812_vm4, 1.0, %v2146_v3  ;;  %p1900_p6 = scmp.ne.s32.totalorder %s2136_s29, 1 }
  0x25   : > { %v2316_v5 = vld [vmem:[#allocation2] sm:$0xff]  ;;  %v2318_v6 = vld [vmem:[#allocation2 + $0x8] sm:$0xff]  ;;  %1946 = vmatpush3.bf16.msra.mxu0 %v2073_v4 }
  0x26   : > { %v744_v7 = vpack.c.bf16 %v2318_v6, %v2316_v5  ;;  %1951 = vmatprep.subr.bf16.mxu0 %v2146_v3  ;;  %v1869_v24 = vld [vmem:[%s2544_s22] ss:$0 sm:$0xff]  ;;  %v1870_v28 = vld [vmem:[%s2544_s22 + $0x1] ss:$0 sm:$0xff] }
  0x27   : > { %v827_v26 = vmul.f32 %v1869_v24, %v1868_v25  ;;  %v828_v30 = vmul.f32 %v1870_v28, %v1868_v25 }
  0x28   : > { %1948 = vmatmul.mubr.msk.bf16.vlgmr.msra.gmra.mxu0 %vm763_vm2, %v744_v7 }
  0x29   : > { %1953 = vmatprep.mubr.msk.bf16.mxu0 %vm2147_vm1, %v2146_v3  ;;  %v829_v27 = vsub.f32 1.0, %v827_v26  ;;  %v830_v35 = vsub.f32 1.0, %v828_v30 }
  0x2b   : > { %v2359_v29 = vmul.f32 -10000.0, %v829_v27  ;;  %v2363_v39 = vmul.f32 -10000.0, %v830_v35 }
  0xe8   : > { %v801_v9 = vpop.f32.mrf.mxu0 }
  0xe9   : > { %v802_v10 = vadd.f32 %v1864_v8, %v801_v9 }
  0xea   : > { %v1949_v11 = vpop.f32.mrf.mxu0 }
  0xeb   : > { %v2334_v12 = vpack.c.bf16 %v802_v10, %v802_v10 }
  0xec   : > { %v804_v13 = vpop.f32.mrf.mxu0 }
  0xed   : > { %v805_v14 = vadd.f32 %v1864_v8, %v804_v13  ;;  %836 = vrot.lane.b32.xlu0 %v2334_v12, %s2148_s15 }
  0xee   : > { %v1950_v15 = vpop.f32.mrf.mxu0 }
  0xef   : > { %v2337_v16 = vpack.c.bf16 %v805_v14, %v805_v14 }
  0xf1   : > { %886 = vrot.lane.b32.xlu0 %v2337_v16, %s2148_s15 }
 0x15f   : > { %v837_v17 = vpop.permute.xlu0 %836 }
 0x160   : > { %v843_v18 = vsel %vm838_vm3, %v837_v17, 0 }
 0x161   : > { %1952 = vmatpush3.bf16.xpose.msra.mxu0 %v843_v18 }
 0x162   : > { %1957 = vmatprep.subr.bf16.mxu0 %v2146_v3 }
 0x163   : > { %v887_v19 = vpop.permute.xlu0 %886 }
 0x164   : > { %v892_v20 = vsel %vm838_vm3, %v887_v19, 0 }
 0x168   : > { %1954 = vmatmul.mubr.msk.bf16.vlgmr.msra.gmra.mxu0 %vm838_vm3, %v2334_v12 }
 0x169   : > { %1958 = vmatpush3.bf16.xpose.msra.mxu0 %v892_v20  ;;  %1959 = vmatprep.mubr.msk.bf16.mxu0 %vm2147_vm1, %v2146_v3 }
 0x16a   : > { %1969 = vmatprep.subr.bf16.mxu0 %v2146_v3 }
 0x170   : > { %1960 = vmatmul.mubr.msk.bf16.vlgmr.msra.gmra.mxu0 %vm838_vm3, %v2337_v16 }
 0x171   : > { %1971 = vmatprep.mubr.msk.bf16.mxu0 %vm2147_vm1, %v2146_v3 }
 0x228   : > { %v879_v31 = vpop.f32.mrf.mxu0 }
 0x229   : > { %v934_v32 = vmul.f32 0.25, %v879_v31 }
 0x22a   : > { %v1955_v33 = vpop.f32.mrf.mxu0 }
 0x22b   : > { %v936_v34 = vadd.f32 %v934_v32, %v2359_v29 }
 0x22c   : > { %v882_v36 = vpop.f32.mrf.mxu0 }
 0x22d   : > { %v939_v37 = vsel %vm938_vm5, %v936_v34, -inf }
 0x22e   : > { %940 = vmax.xlane.f32.xlu1 %v939_v37  ;;  %v1956_v38 = vpop.f32.mrf.mxu0 }
 0x230   : > { %v928_v40 = vpop.f32.mrf.mxu0 }
 0x231   : > { %v935_v41 = vmul.f32 0.25, %v928_v40 }
 0x232   : > { %v1961_v42 = vpop.f32.mrf.mxu0 }
 0x233   : > { %v937_v43 = vadd.f32 %v935_v41, %v2363_v39 }
 0x234   : > { %v931_v44 = vpop.f32.mrf.mxu0 }
 0x235   : > { %v942_v45 = vsel %vm938_vm5, %v937_v43, -inf }
 0x236   : > { %943 = vmax.xlane.f32.xlu1 %v942_v45  ;;  %v1962_v46 = vpop.f32.mrf.mxu0 }
 0x247   : > { %963 = vrot.lane.b32.xlu1 %v2334_v12, %s2149_s4 }
 0x24b   : > { %1012 = vrot.lane.b32.xlu1 %v2337_v16, %s2149_s4 }
 0x24f   : > { %1062 = vrot.lane.b32.xlu1 %v2334_v12, %s2150_s28 }
 0x2b7   : > { %v941_v47 = vpop.xlane.xlu1 %940 }
 0x2b8   : > { %v945_v48 = vsub.f32 %v936_v34, %v941_v47 }
 0x2ba   : > { %v947_v49 = vmul.f32 1.442695, %v945_v48 }
 0x2bc   : > { %2086 = vpow2.f32 %v947_v49 }
 0x2bf   : > { %v944_v50 = vpop.xlane.xlu1 %943 }
 0x2c0   : > { %v946_v51 = vsub.f32 %v937_v43, %v944_v50 }
 0x2c2   : > { %v949_v52 = vmul.f32 1.442695, %v946_v51 }
 0x2c3   : > { %v964_v53 = vpop.permute.xlu1 %963 }
 0x2c4   : > { %2088 = vpow2.f32 %v949_v52  ;;  %v970_v54 = vsel %vm968_vm6, %v964_v53, 0 }
 0x2c5   : > { %1964 = vmatpush3.bf16.msra.mxu1 %v970_v54 }
 0x2c6   : > { %1975 = vmatprep.subr.bf16.mxu1 %v2146_v3 }
 0x2c7   : > { %v1013_v55 = vpop.permute.xlu1 %1012 }
 0x2c8   : > { %v1018_v56 = vsel %vm968_vm6, %v1013_v55, 0 }
 0x2c9   : > { %v2087_v57 = vpop.eup %2086  ;;  %1970 = vmatpush3.bf16.msra.mxu0 %v1018_v56 }
 0x2ca   : > { %v951_v58 = vsel %vm938_vm5, %v2087_v57, 0.0  ;;  %1981 = vmatprep.subr.bf16.mxu0 %v2146_v3 }
 0x2cb   : > { %952 = vadd.xlane.f32.xlu0 %v951_v58  ;;  %v1063_v62 = vpop.permute.xlu1 %1062  ;;  %v2074_v58 = vld [vmem:[%s2264_s27 + $0x8] sm:$0xff]  }
 0x2cc   : > { %v1068_v4 = vsel %vm838_vm3, %v1063_v62, 0 }
 0x2d1   : > { %v2089_v59 = vpop.eup %2088 }
 0x2d2   : > { %v954_v60 = vsel %vm938_vm5, %v2089_v59, 0.0 }
 0x2d3   : > { %955 = vadd.xlane.f32.xlu1 %v954_v60 }
 0x2e1   : > { %1060 = vrot.lane.b32.xlu0 %v2334_v12, %s2151_s24 }
 0x2e4   : > { %1112 = vrot.lane.b32.xlu1 %v2337_v16, %s2150_s28  ;;  %s2547_s28 = scalar_lea.vmem %s2519_s7, %s2251_s17 }
 0x2e8   : > { %1110 = vrot.lane.b32.xlu1 %v2337_v16, %s2151_s24 }
 0x354   : > { %v953_v61 = vpop.xlane.xlu0 %952 }
 0x355   : > { %2090 = vrcp.f32 %v953_v61 }
 0x358   : > { %v1061_v11 = vpop.permute.xlu0 %1060 }
 0x35c   : > { %v956_v63 = vpop.xlane.xlu1 %955 }
 0x35d   : > { %2092 = vrcp.f32 %v956_v63 }
 0x360   : > { %v1113_v9 = vpop.permute.xlu1 %1112 }
 0x361   : > { %v1118_v13 = vsel %vm838_vm3, %v1113_v9, 0 }
 0x362   : > { %v2091_v0 = vpop.eup %2090 }
 0x363   : > { %v959_v1 = vmul.f32 %v2091_v0, %v2087_v57 }
 0x364   : > { %v1111_v14 = vpop.permute.xlu1 %1110 }
 0x365   : > { %v961_v2 = vpack.c.bf16 %v959_v1, %v959_v1 }
 0x367   : > { %1966 = vmatmul.mubr.msk.bf16.vlgmr.msra.gmra.mxu1 %vm938_vm5, %v961_v2 }
 0x368   : > { %1976 = vmatpush3.bf16.xpose.msra.mxu1 %v1068_v4  ;;  %1977 = vmatprep.mubr.msk.bf16.mxu1 %vm2147_vm1, %v2146_v3 }
 0x369   : > { %1987 = vmatprep.subr.bf16.mxu1 %v2146_v3 }
 0x36a   : > { %v2093_v7 = vpop.eup %2092 }
 0x36b   : > { %v960_v8 = vmul.f32 %v2093_v7, %v2089_v59  ;;  %v2075_v59 = vld [vmem:[%s2264_s27] sm:$0xff]  }
 0x36d   : > { %v962_v10 = vpack.c.bf16 %v960_v8, %v960_v8 }
 0x36f   : > { %1972 = vmatmul.mubr.msk.bf16.vlgmr.msra.gmra.mxu0 %vm938_vm5, %v962_v10  ;;  %1978 = vmatmul.mubr.msk.bf16.vlgmr.msra.gmra.mxu1 %vm838_vm3, %v1061_v11 }
 0x370   : > { %1982 = vmatpush3.bf16.xpose.msra.mxu0 %v1118_v13  ;;  %1983 = vmatprep.mubr.msk.bf16.mxu0 %vm2147_vm1, %v2146_v3 }
 0x371   : > { %1993 = vmatprep.subr.bf16.mxu0 %v2146_v3  ;;  %1989 = vmatprep.mubr.msk.bf16.mxu1 %vm2147_vm1, %v2146_v3 }
 0x377   : > { %1984 = vmatmul.mubr.msk.bf16.vlgmr.msra.gmra.mxu0 %vm838_vm3, %v1111_v14 }
 0x378   : > { %1995 = vmatprep.mubr.msk.bf16.mxu0 %vm2147_vm1, %v2146_v3 }
 0x427   : > { %v2395_v15 = vpop.f32.mrf.mxu1 }
 0x429   : > { %v1967_v17 = vpop.f32.mrf.mxu1 }
 0x42a   : > { %v1879_v17 = vld [vmem:[%s2545_s19] ss:$0 sm:$0xff] }
 0x42b   : > { %v1009_v18 = vpop.f32.mrf.mxu1 }
 0x42d   : > { %v1968_v19 = vpop.f32.mrf.mxu1 }
 0x42f   : > { %v2397_v20 = vpop.f32.mrf.mxu0  ;;  %v1104_v21 = vpop.f32.mrf.mxu1 }
 0x430   : > { %v1160_v22 = vmul.f32 0.25, %v1104_v21 }
 0x431   : > { %v1973_v23 = vpop.f32.mrf.mxu0  ;;  %v1979_v24 = vpop.f32.mrf.mxu1 }
 0x432   : > { %v1162_v25 = vadd.f32 %v1160_v22, %v2359_v29 }
 0x433   : > { %v1057_v26 = vpop.f32.mrf.mxu0  ;;  %v1107_v27 = vpop.f32.mrf.mxu1 }
 0x434   : > { %v1164_v28 = vsel %vm938_vm5, %v1162_v25, -inf }
 0x435   : > { %1165 = vmax.xlane.f32.xlu1 %v1164_v28  ;;  %v1974_v30 = vpop.f32.mrf.mxu0  ;;  %v1980_v31 = vpop.f32.mrf.mxu1 }
 0x437   : > { %v1154_v32 = vpop.f32.mrf.mxu0 }
 0x438   : > { %v1161_v33 = vmul.f32 0.25, %v1154_v32 }
 0x439   : > { %v1985_v34 = vpop.f32.mrf.mxu0 }
 0x43a   : > { %v1163_v35 = vadd.f32 %v1161_v33, %v2363_v39 }
 0x43b   : > { %v1157_v36 = vpop.f32.mrf.mxu0 }
 0x43c   : > { %v1167_v37 = vsel %vm938_vm5, %v1163_v35, -inf }
 0x43d   : > { %1168 = vmax.xlane.f32.xlu0 %v1167_v37  ;;  %v1986_v38 = vpop.f32.mrf.mxu0  ;;  %v2077_v37 = vld [vmem:[%s2281_s23] sm:$0xff]  }
 0x43e   : > { %v2078_v38 = vld [vmem:[%s2291_s30 + $0x38] sm:$0xff]  }
 0x453   : > { %1236 = vrot.lane.b32.xlu0 %v2337_v16, %s2152_s20 }
 0x4be   : > { %v1166_v29 = vpop.xlane.xlu1 %1165 }
 0x4bf   : > { %v1170_v40 = vsub.f32 %v1162_v25, %v1166_v29 }
 0x4c1   : > { %v1172_v41 = vmul.f32 1.442695, %v1170_v40 }
 0x4c3   : > { %2094 = vpow2.f32 %v1172_v41 }
 0x4c6   : > { %v1169_v42 = vpop.xlane.xlu0 %1168 }
 0x4c7   : > { %v1171_v43 = vsub.f32 %v1163_v35, %v1169_v42 }
 0x4c9   : > { %v1174_v44 = vmul.f32 1.442695, %v1171_v43 }
 0x4ca   : > { %v1237_v45 = vpop.permute.xlu0 %1236 }
 0x4cb   : > { %2096 = vpow2.f32 %v1174_v44  ;;  %v1242_v46 = vsel %vm968_vm6, %v1237_v45, 0 }
 0x4cc   : > { %1994 = vmatpush3.bf16.msra.mxu0 %v1242_v46 }
 0x4cd   : > { %2007 = vmatprep.subr.bf16.mxu0 %v2146_v3 }
 0x4d0   : > { %v2095_v39 = vpop.eup %2094 }
 0x4d1   : > { %v1176_v47 = vsel %vm938_vm5, %v2095_v39, 0.0 }
 0x4d2   : > { %1177 = vadd.xlane.f32.xlu1 %v1176_v47 }
 0x4d8   : > { %v2097_v48 = vpop.eup %2096 }
 0x4d9   : > { %v1179_v16 = vsel %vm938_vm5, %v2097_v48, 0.0 }
 0x4da   : > { %1180 = vadd.xlane.f32.xlu1 %v1179_v16 }
 0x4eb   : > { %1188 = vrot.lane.b32.xlu1 %v2334_v12, %s2152_s20 }
 0x55b   : > { %v1178_v49 = vpop.xlane.xlu1 %1177 }
 0x55c   : > { %2098 = vrcp.f32 %v1178_v49 }
 0x563   : > { %v1181_v50 = vpop.xlane.xlu1 %1180 }
 0x564   : > { %2100 = vrcp.f32 %v1181_v50 }
 0x567   : > { %v1189_v51 = vpop.permute.xlu1 %1188 }
 0x568   : > { %v1194_v52 = vsel %vm968_vm6, %v1189_v51, 0 }
 0x569   : > { %v2099_v53 = vpop.eup %2098  ;;  %1988 = vmatpush3.bf16.msra.mxu1 %v1194_v52 }
 0x56a   : > { %v1184_v54 = vmul.f32 %v2099_v53, %v2095_v39  ;;  %1999 = vmatprep.subr.bf16.mxu1 %v2146_v3 }
 0x56c   : > { %v1186_v55 = vpack.c.bf16 %v1184_v54, %v1184_v54 }
 0x56e   : > { %1990 = vmatmul.mubr.msk.bf16.vlgmr.msra.gmra.mxu1 %vm938_vm5, %v1186_v55  ;;  %v1883_v55 = vld [vmem:[%s2546_s25] ss:$0 sm:$0xff] }
 0x56f   : > { %2003 = vmatprep.mubr.msk.bf16.mxu1 %vm2147_vm1, %v2146_v3  ;;  %2000 = vmatpush3.bf16.msra.mxu1 %v2074_v58  ;;  %v1884_v58 = vld [vmem:[%s2547_s28] ss:$0 sm:$0xff] }
 0x570   : > { %2001 = vmatprep.subr.bf16.mxu1 %v2146_v3 }
 0x571   : > { %v2101_v12 = vpop.eup %2100 }
 0x572   : > { %v1185_v56 = vmul.f32 %v2101_v12, %v2097_v48 }
 0x573   : > { %2002 = vmatpush3.bf16.msra.mxu1 %v2075_v59 }
 0x574   : > { %v1187_v57 = vpack.c.bf16 %v1185_v56, %v1185_v56  ;;  %2015 = vmatprep.subr.bf16.mxu1 %v2146_v3 }
 0x576   : > { %1996 = vmatmul.mubr.msk.bf16.vlgmr.msra.gmra.mxu0 %vm938_vm5, %v1187_v57 }
 0x577   : > { %2011 = vmatprep.mubr.msk.bf16.mxu0 %vm2147_vm1, %v2146_v3 }
 0x62e   : > { %v1230_v60 = vpop.f32.mrf.mxu1 }
 0x630   : > { %v1991_v61 = vpop.f32.mrf.mxu1 }
 0x632   : > { %v1233_v62 = vpop.f32.mrf.mxu1 }
 0x634   : > { %v1992_v63 = vpop.f32.mrf.mxu1 }
 0x635   : > { %v2079_v63 = vld [vmem:[%s2291_s30 + $0x30] sm:$0xff]  }
 0x636   : > { %v1278_v0 = vpop.f32.mrf.mxu0 }
 0x637   : > { %v2067_v1 = vpack.i.bf16 %v1278_v0, %v1230_v60  ;;  %v2080_v0 = vld [vmem:[%s2291_s30 + $0x28] sm:$0xff]  }
 0x638   : > { %v1997_v2 = vpop.f32.mrf.mxu0 }
 0x639   : > { %2068 = vrot.lane.b32.xlu1 %v2067_v1, %s2153_s14  ;;  %v2081_v1 = vld [vmem:[%s2291_s30 + $0x20] sm:$0xff]   ;;  %v2082_v2 = vld [vmem:[%s2291_s30 + $0x18] sm:$0xff]  }
 0x63a   : > { %v1281_v4 = vpop.f32.mrf.mxu0 }
 0x63b   : > { %v2083_v4 = vld [vmem:[%s2291_s30 + $0x10] sm:$0xff]  }
 0x63c   : > { %v1998_v7 = vpop.f32.mrf.mxu0 }
 0x63d   : > { %v2084_v7 = vld [vmem:[%s2291_s30 + $0x8] sm:$0xff]  }
 0x6ab   : > { %v2069_v8 = vpop.permute.xlu1 %2068 }
 0x6ac   : > { %v2071_v9 = vunpack.i.h.bf16 %v2069_v8  ;;  %v2070_v10 = vunpack.i.l.bf16 %v2069_v8  ;;  %v2085_v8 = vld [vmem:[%s2291_s30] sm:$0xff]  }
 0x6ae   : > { %v1293_v11 = vsel %vm838_vm3, %v2397_v20, %v2071_v9  ;;  %v1292_v13 = vsel %vm838_vm3, %v2395_v15, %v2070_v10  ;;  %v1885_v9 = vld [vmem:[%s673_s2] ss:$0 sm:$0xff] }
 0x6af   : > { %v1294_v14 = vpack.c.bf16 %v1293_v11, %v1292_v13 }
 0x6b1   : > { %2004 = vmatmul.mubr.msk.bf16.vlgmr.msra.gmra.mxu1 %vm763_vm2, %v1294_v14 }
 0x6b2   : > { %2031 = vmatprep.mubr.msk.bf16.mxu1 %vm2147_vm1, %v2146_v3  ;;  %2016 = vmatpush3.bf16.msra.mxu1 %v2078_v38 }
 0x6b3   : > { %2017 = vmatprep.subr.bf16.mxu1 %v2146_v3 }
 0x6b6   : > { %2018 = vmatpush3.bf16.msra.mxu1 %v2079_v63 }
 0x6b7   : > { %2019 = vmatprep.subr.bf16.mxu1 %v2146_v3 }
 0x6ba   : > { %2020 = vmatpush3.bf16.msra.mxu1 %v2080_v0  ;;  %v1899_v0 = vld [vmem:[%s687_s1] ss:$0 sm:$0xff] }
 0x6bb   : > { %2021 = vmatprep.subr.bf16.mxu1 %v2146_v3 }
 0x6be   : > { %2022 = vmatpush3.bf16.msra.mxu1 %v2081_v1 }
 0x6bf   : > { %2023 = vmatprep.subr.bf16.mxu1 %v2146_v3 }
 0x6c2   : > { %2024 = vmatpush3.bf16.msra.mxu1 %v2082_v2 }
 0x6c3   : > { %2025 = vmatprep.subr.bf16.mxu1 %v2146_v3 }
 0x6c6   : > { %2026 = vmatpush3.bf16.msra.mxu1 %v2083_v4 }
 0x6c7   : > { %2027 = vmatprep.subr.bf16.mxu1 %v2146_v3 }
 0x6ca   : > { %2028 = vmatpush3.bf16.msra.mxu1 %v2084_v7 }
 0x6cb   : > { %2029 = vmatprep.subr.bf16.mxu1 %v2146_v3 }
 0x6ce   : > { %2030 = vmatpush3.bf16.msra.mxu1 %v2085_v8 }
 0x771   : > { %v1350_v18 = vpop.f32.mrf.mxu1 }
 0x772   : > { %v1351_v19 = vadd.f32 %v1879_v17, %v1350_v18 }
 0x773   : > { %v2005_v21 = vpop.f32.mrf.mxu1 }
 0x774   : > { %v1357_v22 = vadd.f32 %v1351_v19, %v2316_v5 }
 0x775   : > { %v1353_v20 = vpop.f32.mrf.mxu1 }
 0x776   : > { %v1354_v23 = vadd.f32 %v1879_v17, %v1353_v20  ;;  %v1359_v15 = vsel %vm763_vm2, %v1357_v22, 0.0 }
 0x777   : > { %1360 = vadd.xlane.f32.xlu1 %v1359_v15  ;;  %v2006_v24 = vpop.f32.mrf.mxu1 }
 0x778   : > { %v1358_v25 = vadd.f32 %v1354_v23, %v2318_v6  ;;  %v2076_v6 = vld [vmem:[%s2281_s23 + $0x8] sm:$0xff]   ;;  %s2548_s23 = sld [smem:[#allocation10_spill]] (!%p1900_p6) }
 0x779   : > { %2008 = vmatpush3.bf16.msra.mxu0 %v2076_v6 }
 0x77a   : > { %v1362_v26 = vsel %vm763_vm2, %v1358_v25, 0.0  ;;  %2009 = vmatprep.subr.bf16.mxu0 %v2146_v3 }
 0x77b   : > { %1363 = vadd.xlane.f32.xlu0 %v1362_v26 }
 0x77d   : > { %2010 = vmatpush3.bf16.msra.mxu0 %v2077_v37 }
 0x800   : > { %v1361_v27 = vpop.xlane.xlu1 %1360 }
 0x801   : > { %v1366_v28 = vmul.f32 0.03125, %v1361_v27 }
 0x803   : > { %v1368_v30 = vsub.f32 %v1357_v22, %v1366_v28  ;;  %v1889_v28 = vld [vmem:[%s681_s0] ss:$0 sm:$0xff] }
 0x804   : > { %v1364_v31 = vpop.xlane.xlu0 %1363 }
 0x805   : > { %v1367_v32 = vmul.f32 0.03125, %v1364_v31  ;;  %v1370_v5 = vmul.f32 %v1368_v30, %v1368_v30 }
 0x807   : > { %v1369_v33 = vsub.f32 %v1358_v25, %v1367_v32  ;;  %v1372_v34 = vsel %vm763_vm2, %v1370_v5, 0.0 }
 0x808   : > { %1373 = vadd.xlane.f32.xlu0 %v1372_v34 }
 0x809   : > { %v1371_v35 = vmul.f32 %v1369_v33, %v1369_v33 }
 0x80b   : > { %v1375_v36 = vsel %vm763_vm2, %v1371_v35, 0.0 }
 0x80c   : > { %1376 = vadd.xlane.f32.xlu1 %v1375_v36 }
 0x891   : > { %v1374_v29 = vpop.xlane.xlu0 %1373 }
 0x892   : > { %v1378_v40 = vmul.f32 0.03125, %v1374_v29 }
 0x894   : > { %v1380_v41 = vadd.f32 1e-12, %v1378_v40 }
 0x895   : > { %v1377_v42 = vpop.xlane.xlu1 %1376 }
 0x896   : > { %2102 = vrsqrt.f32 %v1380_v41  ;;  %v1379_v43 = vmul.f32 0.03125, %v1377_v42  ;;  %vm1384_vm7 = vcmp.eq.f32.partialorder %v1380_v41, inf  ;;  %v1387_v39 = vand.u32 2147483648, %v1380_v41 }
 0x897   : > { %vm1386_vm8 = vcmp.eq.f32.partialorder %v1380_v41, 0.0 }
 0x898   : > { %v1381_v44 = vadd.f32 1e-12, %v1379_v43 }
 0x89a   : > { %2104 = vrsqrt.f32 %v1381_v44  ;;  %vm1391_vm9 = vcmp.eq.f32.partialorder %v1381_v44, inf  ;;  %v1394_v50 = vand.u32 2147483648, %v1381_v44  ;;  %vm1393_vm10 = vcmp.eq.f32.partialorder %v1381_v44, 0.0 }
 0x8a3   : > { %v2103_v45 = vpop.eup %2102 }
 0x8a4   : > { %v1383_v46 = vmul.f32 %v2103_v45, %v1380_v41 }
 0x8a6   : > { %v1385_v47 = vsel %vm1384_vm7, %v1380_v41, %v1383_v46 }
 0x8a7   : > { %v1388_v48 = vsel %vm1386_vm8, %v1387_v39, %v1385_v47  ;;  %v2105_v16 = vpop.eup %2104 }
 0x8a8   : > { %2106 = vrcp.f32 %v1388_v48  ;;  %v1390_v49 = vmul.f32 %v2105_v16, %v1381_v44 }
 0x8aa   : > { %v1392_v51 = vsel %vm1391_vm9, %v1381_v44, %v1390_v49 }
 0x8ab   : > { %v1395_v52 = vsel %vm1393_vm10, %v1394_v50, %v1392_v51 }
 0x8ac   : > { %2108 = vrcp.f32 %v1395_v52 }
 0x8b5   : > { %v2107_v53 = vpop.eup %2106 }
 0x8b6   : > { %v1397_v54 = vmul.f32 %v2107_v53, %v1368_v30 }
 0x8b8   : > { %v1406_v57 = vmul.f32 %v1883_v55, %v1397_v54 }
 0x8b9   : > { %v2109_v12 = vpop.eup %2108 }
 0x8ba   : > { %v1399_v56 = vmul.f32 %v2109_v12, %v1369_v33  ;;  %v1414_v60 = vadd.f32 %v1884_v58, %v1406_v57 }
 0x8bc   : > { %v1407_v59 = vmul.f32 %v1883_v55, %v1399_v56 }
 0x8be   : > { %v1415_v61 = vadd.f32 %v1884_v58, %v1407_v59 }
 0x8c0   : > { %v1416_v62 = vpack.c.bf16 %v1415_v61, %v1414_v60 }
 0x8c2   : > { %2012 = vmatmul.mubr.msk.bf16.vlgmr.msra.gmra.mxu0 %vm763_vm2, %v1416_v62  ;;  %v1898_v62 = vld [vmem:[%s684_s21] ss:$0 sm:$0xff] }
 0x982   : > { %v1472_v10 = vpop.f32.mrf.mxu0 }
 0x983   : > { %v1473_v11 = vadd.f32 %v1885_v9, %v1472_v10 }
 0x984   : > { %v2013_v13 = vpop.f32.mrf.mxu0 }
 0x985   : > { %v1482_v14 = vmul.f32 0.70710677, %v1473_v11  ;;  %v1479_v23 = vmul.f32 0.5, %v1473_v11 }
 0x986   : > { %v1475_v17 = vpop.f32.mrf.mxu0 }
 0x987   : > { %2110 = verf.f32 %v1482_v14  ;;  %v1476_v18 = vadd.f32 %v1885_v9, %v1475_v17 }
 0x988   : > { %v2014_v19 = vpop.f32.mrf.mxu0 }
 0x989   : > { %v1483_v21 = vmul.f32 0.70710677, %v1476_v18  ;;  %v1480_v15 = vmul.f32 0.5, %v1476_v18 }
 0x98b   : > { %2112 = verf.f32 %v1483_v21 }
 0x994   : > { %v2111_v22 = vpop.eup %2110 }
 0x995   : > { %v1486_v3 = vadd.f32 1.0, %v2111_v22 }
 0x997   : > { %v1488_v25 = vmul.f32 %v1486_v3, %v1479_v23 }
 0x998   : > { %v2113_v20 = vpop.eup %2112 }
 0x999   : > { %v1487_v24 = vadd.f32 1.0, %v2113_v20 }
 0x99b   : > { %v1489_v26 = vmul.f32 %v1487_v24, %v1480_v15 }
 0x99d   : > { %v1490_v27 = vpack.c.bf16 %v1489_v26, %v1488_v25 }
 0x99f   : > { %2032 = vmatmul.mubr.bf16.vlgmr.msra.gmra.mxu1 %v1490_v27 }
 0xa5f   : > { %v1579_v30 = vpop.f32.mrf.mxu1 }
 0xa60   : > { %v1580_v31 = vadd.f32 %v1889_v28, %v1579_v30 }
 0xa61   : > { %v2033_v32 = vpop.f32.mrf.mxu1 }
 0xa62   : > { %v1586_v5 = vadd.f32 %v1580_v31, %v1414_v60 }
 0xa63   : > { %v1582_v33 = vpop.f32.mrf.mxu1 }
 0xa64   : > { %v1583_v34 = vadd.f32 %v1889_v28, %v1582_v33  ;;  %v1588_v35 = vsel %vm763_vm2, %v1586_v5, 0.0 }
 0xa65   : > { %1589 = vadd.xlane.f32.xlu0 %v1588_v35  ;;  %v2034_v36 = vpop.f32.mrf.mxu1 }
 0xa66   : > { %v1587_v6 = vadd.f32 %v1583_v34, %v1415_v61 }
 0xa68   : > { %v1591_v37 = vsel %vm763_vm2, %v1587_v6, 0.0 }
 0xa69   : > { %1592 = vadd.xlane.f32.xlu1 %v1591_v37 }
 0xaee   : > { %v1590_v38 = vpop.xlane.xlu0 %1589 }
 0xaef   : > { %v1594_v29 = vmul.f32 0.03125, %v1590_v38 }
 0xaf1   : > { %v1596_v40 = vsub.f32 %v1586_v5, %v1594_v29 }
 0xaf2   : > { %v1593_v41 = vpop.xlane.xlu1 %1592 }
 0xaf3   : > { %v1595_v42 = vmul.f32 0.03125, %v1593_v41  ;;  %v1598_v43 = vmul.f32 %v1596_v40, %v1596_v40 }
 0xaf5   : > { %v1597_v44 = vsub.f32 %v1587_v6, %v1595_v42  ;;  %v1600_v45 = vsel %vm763_vm2, %v1598_v43, 0.0 }
 0xaf6   : > { %1601 = vadd.xlane.f32.xlu0 %v1600_v45 }
 0xaf7   : > { %v1599_v46 = vmul.f32 %v1597_v44, %v1597_v44 }
 0xaf9   : > { %v1603_v39 = vsel %vm763_vm2, %v1599_v46, 0.0 }
 0xafa   : > { %1604 = vadd.xlane.f32.xlu1 %v1603_v39 }
 0xb7f   : > { %v1602_v47 = vpop.xlane.xlu0 %1601 }
 0xb80   : > { %v1606_v48 = vmul.f32 0.03125, %v1602_v47 }
 0xb82   : > { %v1608_v16 = vadd.f32 1e-12, %v1606_v48 }
 0xb83   : > { %v1605_v49 = vpop.xlane.xlu1 %1604 }
 0xb84   : > { %2114 = vrsqrt.f32 %v1608_v16  ;;  %v1607_v50 = vmul.f32 0.03125, %v1605_v49  ;;  %vm1612_vm11 = vcmp.eq.f32.partialorder %v1608_v16, inf  ;;  %v1615_v54 = vand.u32 2147483648, %v1608_v16 }
 0xb85   : > { %vm1614_vm12 = vcmp.eq.f32.partialorder %v1608_v16, 0.0 }
 0xb86   : > { %v1609_v51 = vadd.f32 1e-12, %v1607_v50 }
 0xb88   : > { %2116 = vrsqrt.f32 %v1609_v51  ;;  %vm1619_vm13 = vcmp.eq.f32.partialorder %v1609_v51, inf  ;;  %v1622_v58 = vand.u32 2147483648, %v1609_v51  ;;  %vm1621_vm14 = vcmp.eq.f32.partialorder %v1609_v51, 0.0 }
 0xb91   : > { %v2115_v52 = vpop.eup %2114 }
 0xb92   : > { %v1611_v53 = vmul.f32 %v2115_v52, %v1608_v16 }
 0xb94   : > { %v1613_v55 = vsel %vm1612_vm11, %v1608_v16, %v1611_v53 }
 0xb95   : > { %v1616_v12 = vsel %vm1614_vm12, %v1615_v54, %v1613_v55  ;;  %v2117_v56 = vpop.eup %2116 }
 0xb96   : > { %2118 = vrcp.f32 %v1616_v12  ;;  %v1618_v57 = vmul.f32 %v2117_v56, %v1609_v51 }
 0xb98   : > { %v1620_v59 = vsel %vm1619_vm13, %v1609_v51, %v1618_v57 }
 0xb99   : > { %v1623_v60 = vsel %vm1621_vm14, %v1622_v58, %v1620_v59 }
 0xb9a   : > { %2120 = vrcp.f32 %v1623_v60 }
 0xba3   : > { %v2119_v61 = vpop.eup %2118 }
 0xba4   : > { %v1625_v63 = vmul.f32 %v2119_v61, %v1596_v40 }
 0xba6   : > { %v1634_v1 = vmul.f32 %v1898_v62, %v1625_v63 }
 0xba7   : > { %v2121_v2 = vpop.eup %2120 }
 0xba8   : > { %v1642_v4 = vadd.f32 %v1899_v0, %v1634_v1  ;;  %v1627_v7 = vmul.f32 %v2121_v2, %v1597_v44 }
 0xbaa   : > { %1644 = vst.msk [vmem:[#allocation2] sm:$0xff] %vm763_vm2, %v1642_v4  ;;  %v1635_v8 = vmul.f32 %v1898_v62, %v1627_v7  ;;  %1649 = sbr.rel (%p1900_p6) target bundleno = 2992 (0xbb0), region = 84 }
 0xbac   : > { %v1643_v9 = vadd.f32 %v1899_v0, %v1635_v8 }
 0xbae   : > { %1645 = vst.msk [vmem:[#allocation2 + $0x8] sm:$0xff] %vm763_vm2, %v1643_v9 }
 0xbaf   : > { %1650 = vst.msk [vmem:[%s2548_s23] sm:$0xff] %vm763_vm2, %v1642_v4  ;;  %1651 = vst.msk [vmem:[%s2548_s23 + $0x8] sm:$0xff] %vm763_vm2, %v1643_v9 }
 0xbb0 PF: > { %s2549_s18 = sld [smem:[#allocation4_spill]] }
 0xbb1   : > { %s2550_s29 = sld [smem:[#allocation3_spill]] }
 0xbb2   : > { %s2551_s30 = sld [smem:[#allocation5_spill]] }
 0xbb6   : > { %s24_s15 = sadd.s32 1, %s2549_s18  }
 0xbb7   : > { %p21_p7 = scmp.ge.s32.totalorder %s24_s15, 4  }
 0xbb9   :  { %23 = sbr.rel (!%p21_p7) target bundleno = 6 (0x6), region = 153 }

</bundles_post_ra>
